<compile_context>
chip_gen: v7x
topology: tpu7x:2x2x1
jax: 0.10.0
libtpu: 0.0.40
codegen_flags: <defaults>
</compile_context>

<pallas_src>
import functools

import jax
import jax.numpy as jnp
from jax.experimental import pallas as pl
from jax.experimental.pallas import tpu as pltpu

# ----------------------------- model hyper-params ---------------------------
EMB = 32            # embedding_dim
HEAD_NUM = 4        # head_num
HEAD_DIM = 8        # qkv_dim   (HEAD_NUM * HEAD_DIM == EMB)
FF_HID = 64         # ff_hidden_dim
N_LAYERS = 2        # encoder_layer_num
STOCHASTIC_PRIZE = True     # -> node features = 4, else 3
EPS = 1e-5          # InstanceNorm1d default eps

N_DEPOT = 2
N_NODE = 6
BATCH = 2
DEPOT_FEAT = 3
NODE_FEAT = 4 if STOCHASTIC_PRIZE else 3
SEQ = N_DEPOT + N_NODE

FAUG = 16                           # padded augmented embedding-input width
SMALL_ROWS = FAUG + 8 * N_LAYERS    # 32 : [W_aug ; per-layer vec slabs]


# ------------------------------- fused kernel --------------------------------
def fused_encoder_kernel(xaug_ref, smalls_ref, wqkv_ref, wc_ref, w1_ref,
                         w2_ref, o_ref, *, B, N):
    """Embedding + N_LAYERS encoder layers, fully resident in VMEM."""
    E, H, D, FF = EMB, HEAD_NUM, HEAD_DIM, FF_HID
    BN = B * N
    G = H * B                                   # collapsed (head, batch) axis

    smalls = smalls_ref[...]                    # (SMALL_ROWS, FF)
    w_aug = smalls[0:FAUG, 0:E]                 # [Wd; Wn; bd; bn; 0-pad]

    # fused depot/node embedding: rows are already interleaved (depot rows
    # then node rows per batch element) and biases are indicator columns.
    x = jnp.dot(xaug_ref[...], w_aug,
                preferred_element_type=jnp.float32)          # (BN, E)

    inv_n = 1.0 / N

    def inorm(y2d, gamma, beta):
        # one-pass instance norm over the sequence axis per (batch, channel);
        # gamma folded into the rsqrt scale -> single FMA per element.
        y = y2d.reshape(B, N, E)
        s1 = jnp.sum(y, axis=1, keepdims=True)               # (B,1,E)
        s2 = jnp.sum(y * y, axis=1, keepdims=True)           # (B,1,E)
        mean = s1 * inv_n
        var = s2 * inv_n - mean * mean
        scale = gamma.reshape(1, 1, E) * jax.lax.rsqrt(var + EPS)
        shift = beta.reshape(1, 1, E) - mean * scale
        return (y * scale + shift).reshape(BN, E)

    # ----- encoder layers (statically unrolled) -----
    for li in range(N_LAYERS):
        wqkv = wqkv_ref[li]                     # (E, 3E), Wq pre-scaled
        wc = wc_ref[li]                         # (H, D, E)
        w1 = w1_ref[li]                         # (E, FF)
        w2 = w2_ref[li]                         # (FF, E)
        base = FAUG + 8 * li
        vec = smalls[base:base + 8, :]          # (8, FF) per-layer vector slab
        bc, g1, be1 = vec[0:1, 0:E], vec[1:2, 0:E], vec[2:3, 0:E]
        b2, g2, be2 = vec[3:4, 0:E], vec[4:5, 0:E], vec[5:6, 0:E]
        b1 = vec[6:7, 0:FF]                     # (1, FF)

        # fused q/k/v projection (single matmul, no bias)
        qkv = jnp.dot(x, wqkv, preferred_element_type=jnp.float32)   # (BN, 3E)

        def heads(off):
            # (BN, 3E) -> (H*B, N, D): per-head lane slices stacked along a new
            # OUTER axis (cheap vreg placement, no lane concat, no transpose).
            return jnp.stack(
                [qkv[:, off + h * D: off + (h + 1) * D] for h in range(H)],
                axis=0).reshape(G, N, D)

        qh, kh, vh = heads(0), heads(E), heads(2 * E)

        # all heads + batches in one batched score einsum / softmax / PV einsum
        s = jnp.einsum('gnd,gmd->gnm', qh, kh,
                       preferred_element_type=jnp.float32)    # (G, N, N)
        s = s - jnp.max(s, axis=-1, keepdims=True)
        p = jnp.exp(s)
        p = p / jnp.sum(p, axis=-1, keepdims=True)
        ctx = jnp.einsum('gnm,gmd->gnd', p, vh,
                         preferred_element_type=jnp.float32)  # (G, N, D)

        # head-combine fused into a per-head-batched contraction with Wc
        # stored as (H, D, E); the 4-way lane concat + separate att@Wc is gone.
        ctx = ctx.reshape(H, BN, D)
        comb = jnp.einsum('hnd,hde->hne', ctx, wc,
                          preferred_element_type=jnp.float32)  # (H, BN, E)
        mh = jnp.sum(comb, axis=0) + bc                        # (BN, E)

        # add & instance-norm 1
        norm1 = inorm(x + mh, g1, be1)

        # feed-forward
        h1 = jnp.maximum(
            jnp.dot(norm1, w1, preferred_element_type=jnp.float32) + b1, 0.0)
        ff = jnp.dot(h1, w2, preferred_element_type=jnp.float32) + b2

        # add & instance-norm 2
        x = inorm(norm1 + ff, g2, be2)

    o_ref[...] = x                               # 2-D (BN, E); reshaped outside


# ------------------------------- wrapper --------------------------------------
def _full_spec(shape):
    rank = len(shape)
    return pl.BlockSpec(shape, lambda i, _r=rank: (0,) * _r)


def ophssp_encoder(depot_xy_day, node_xy_prize, packed):
    B, Nd, Fd = depot_xy_day.shape
    _, Nn, Fn = node_xy_prize.shape
    N = Nd + Nn
    assert Fd + Fn + 2 <= FAUG

    # Build the augmented, row-interleaved embedding input in the wrapper so the
    # kernel's embedding is ONE matmul (no in-kernel slice/concat, fewer DMAs).
    dep = jnp.zeros((B, Nd, FAUG), jnp.float32)
    dep = dep.at[:, :, 0:Fd].set(depot_xy_day)
    dep = dep.at[:, :, Fd + Fn].set(1.0)             # depot bias indicator
    nod = jnp.zeros((B, Nn, FAUG), jnp.float32)
    nod = nod.at[:, :, Fd:Fd + Fn].set(node_xy_prize)
    nod = nod.at[:, :, Fd + Fn + 1].set(1.0)         # node bias indicator
    xaug = jnp.concatenate([dep, nod], axis=1).reshape(B * N, FAUG)

    kernel = functools.partial(fused_encoder_kernel, B=B, N=N)

    out2d = pl.pallas_call(
        kernel,
        out_shape=jax.ShapeDtypeStruct((B * N, EMB), jnp.float32),
        grid=(1,),
        in_specs=[
            _full_spec((B * N, FAUG)),                     # interleaved input
            _full_spec((SMALL_ROWS, FF_HID)),              # W_aug + all vectors
            _full_spec((N_LAYERS, EMB, 3 * EMB)),          # Wqkv (Wq pre-scaled)
            _full_spec((N_LAYERS, HEAD_NUM, HEAD_DIM, EMB)),  # Wc as (H,D,E)
            _full_spec((N_LAYERS, EMB, FF_HID)),           # W1
            _full_spec((N_LAYERS, FF_HID, EMB)),           # W2
        ],
        out_specs=_full_spec((B * N, EMB)),
        compiler_params=pltpu.CompilerParams(
            dimension_semantics=("arbitrary",)),
        # TODO(synk): for large deployment batches, switch grid to
        # (num_batch_blocks,) marked "parallel" so v7x megacore shards batch
        # blocks across both TensorCores; at B=2 a single step is optimal.
    )(xaug, packed["smalls"], packed["Wqkv"], packed["Wc"],
      packed["W1"], packed["W2"])
    return out2d.reshape(B, N, EMB)


# -------------------------- deterministic params -----------------------------
def init_params(key):
    def nrm(k, shape, scale=0.1):
        return (scale * jax.random.normal(k, shape)).astype(jnp.float32)

    keys = jax.random.split(key, 4 + N_LAYERS)
    params = {
        "Wd": nrm(keys[0], (DEPOT_FEAT, EMB)),
        "bd": nrm(keys[1], (1, EMB)),
        "Wn": nrm(keys[2], (NODE_FEAT, EMB)),
        "bn": nrm(keys[3], (1, EMB)),
        "layers": [],
    }
    for li in range(N_LAYERS):
        lk = jax.random.split(keys[4 + li], 10)
        params["layers"].append({
            "Wq": nrm(lk[0], (EMB, HEAD_NUM * HEAD_DIM)),
            "Wk": nrm(lk[1], (EMB, HEAD_NUM * HEAD_DIM)),
            "Wv": nrm(lk[2], (EMB, HEAD_NUM * HEAD_DIM)),
            "Wc": nrm(lk[3], (HEAD_NUM * HEAD_DIM, EMB)),
            "bc": nrm(lk[4], (1, EMB)),
            "g1": jnp.ones((1, EMB), jnp.float32),    # InstanceNorm affine init
            "be1": jnp.zeros((1, EMB), jnp.float32),
            "W1": nrm(lk[5], (EMB, FF_HID)),
            "b1": nrm(lk[6], (1, FF_HID)),
            "W2": nrm(lk[7], (FF_HID, EMB)),
            "b2": nrm(lk[8], (1, EMB)),
            "g2": jnp.ones((1, EMB), jnp.float32),
            "be2": jnp.zeros((1, EMB), jnp.float32),
        })
    return params


def pack_params(params):
    """Fuse Wq/Wk/Wv (Wq pre-scaled by 1/sqrt(head_dim)), store Wc as (H,D,E),
    and pack the augmented embedding weight + every tiny per-layer vector
    (bc,g1,be1,b2,g2,be2,b1) into a single 'smalls' slab."""
    scale = 1.0 / jnp.sqrt(jnp.float32(HEAD_DIM))
    layers = params["layers"]
    Fd, Fn = DEPOT_FEAT, NODE_FEAT

    smalls = jnp.zeros((SMALL_ROWS, FF_HID), jnp.float32)
    # augmented embedding weight: rows [0:Fd]=Wd, [Fd:Fd+Fn]=Wn, then bd, bn.
    smalls = smalls.at[0:Fd, 0:EMB].set(params["Wd"])
    smalls = smalls.at[Fd:Fd + Fn, 0:EMB].set(params["Wn"])
    smalls = smalls.at[Fd + Fn, 0:EMB].set(params["bd"][0])
    smalls = smalls.at[Fd + Fn + 1, 0:EMB].set(params["bn"][0])
    for li, lp in enumerate(layers):
        base = FAUG + 8 * li
        vec6 = jnp.concatenate([lp["bc"], lp["g1"], lp["be1"],
                                lp["b2"], lp["g2"], lp["be2"]], axis=0)
        smalls = smalls.at[base:base + 6, 0:EMB].set(vec6)
        smalls = smalls.at[base + 6, 0:FF_HID].set(lp["b1"][0])

    packed = {
        "smalls": smalls,                                                # (32,64)
        "Wqkv": jnp.stack([
            jnp.concatenate([lp["Wq"] * scale, lp["Wk"], lp["Wv"]], axis=1)
            for lp in layers]),                                          # (L,E,3E)
        "Wc": jnp.stack([lp["Wc"].reshape(HEAD_NUM, HEAD_DIM, EMB)
                         for lp in layers]),                             # (L,H,D,E)
        "W1": jnp.stack([lp["W1"] for lp in layers]),                    # (L,E,FF)
        "W2": jnp.stack([lp["W2"] for lp in layers]),                    # (L,FF,E)
    }
    return packed


# ---------------------------------- main -------------------------------------
if __name__ == "__main__":
    key = jax.random.PRNGKey(0)
    kd, kn, kp = jax.random.split(key, 3)

    depot_xy_day = jax.random.uniform(kd, (BATCH, N_DEPOT, DEPOT_FEAT),
                                      jnp.float32)
    node_xy_prize = jax.random.uniform(kn, (BATCH, N_NODE, NODE_FEAT),
                                       jnp.float32)

    params = init_params(kp)
    packed = pack_params(params)      # done once, outside the per-call path

    fwd = jax.jit(functools.partial(ophssp_encoder, packed=packed))
    out = jax.block_until_ready(fwd(depot_xy_day, node_xy_prize))

    assert out.shape == (BATCH, SEQ, EMB), out.shape
    print("KERNEL_OK")
</pallas_src>

<mosaic_0001>
module attributes {stable_mosaic.version = 11 : i64} {
  func.func @fused_encoder_kernel(%arg0: i32, %arg1: memref<16x16xf32, #tpu.memory_space<vmem>>, %arg2: memref<32x64xf32, #tpu.memory_space<vmem>>, %arg3: memref<2x32x96xf32, #tpu.memory_space<vmem>>, %arg4: memref<2x4x8x32xf32, #tpu.memory_space<vmem>>, %arg5: memref<2x32x64xf32, #tpu.memory_space<vmem>>, %arg6: memref<2x64x32xf32, #tpu.memory_space<vmem>>, %arg7: memref<16x32xf32, #tpu.memory_space<vmem>>) attributes {dimension_semantics = [#tpu.dimension_semantics<arbitrary>], iteration_bounds = array<i64: 1>, scalar_prefetch = 0 : i64, scratch_operands = 0 : i64, tpu.core_type = #tpu.core_type<tc>, window_params = [{pipeline_mode = #tpu.pipeline_mode<synchronous>, transform_indices = @transform_0, window_bounds = array<i64: 16, 16>}, {pipeline_mode = #tpu.pipeline_mode<synchronous>, transform_indices = @transform_1, window_bounds = array<i64: 32, 64>}, {pipeline_mode = #tpu.pipeline_mode<synchronous>, transform_indices = @transform_2, window_bounds = array<i64: 2, 32, 96>}, {pipeline_mode = #tpu.pipeline_mode<synchronous>, transform_indices = @transform_3, window_bounds = array<i64: 2, 4, 8, 32>}, {pipeline_mode = #tpu.pipeline_mode<synchronous>, transform_indices = @transform_4, window_bounds = array<i64: 2, 32, 64>}, {pipeline_mode = #tpu.pipeline_mode<synchronous>, transform_indices = @transform_5, window_bounds = array<i64: 2, 64, 32>}, {pipeline_mode = #tpu.pipeline_mode<synchronous>, transform_indices = @transform_6, window_bounds = array<i64: 16, 32>}]} {
    %c0 = arith.constant 0 : index
    %c0_0 = arith.constant 0 : index
    %0 = vector.load %arg2[%c0, %c0_0] : memref<32x64xf32, #tpu.memory_space<vmem>>, vector<32x64xf32>
    %1 = vector.extract_strided_slice %0 {offsets = [0, 0], sizes = [16, 32], strides = [1, 1]} : vector<32x64xf32> to vector<16x32xf32>
    %c0_1 = arith.constant 0 : index
    %c0_2 = arith.constant 0 : index
    %2 = vector.load %arg1[%c0_1, %c0_2] : memref<16x16xf32, #tpu.memory_space<vmem>>, vector<16x16xf32>
    %cst = arith.constant dense<0.000000e+00> : vector<16x32xf32>
    %3 = tpu.matmul %2, %1, %cst {dimension_numbers = #tpu.dot_dimension_numbers<[1], [0], [0], [1], [0, 0, 1, 1], [], []>} : vector<16x16xf32>, vector<16x32xf32>, vector<16x32xf32> -> vector<16x32xf32>
    %c0_3 = arith.constant 0 : index
    %c0_4 = arith.constant 0 : index
    %c0_5 = arith.constant 0 : index
    %4 = vector.load %arg3[%c0_3, %c0_4, %c0_5] : memref<2x32x96xf32, #tpu.memory_space<vmem>>, vector<1x32x96xf32>
    %5 = vector.shape_cast %4 : vector<1x32x96xf32> to vector<32x96xf32>
    %c0_6 = arith.constant 0 : index
    %c0_7 = arith.constant 0 : index
    %c0_8 = arith.constant 0 : index
    %c0_9 = arith.constant 0 : index
    %6 = vector.load %arg4[%c0_6, %c0_7, %c0_8, %c0_9] : memref<2x4x8x32xf32, #tpu.memory_space<vmem>>, vector<1x4x8x32xf32>
    %7 = vector.shape_cast %6 : vector<1x4x8x32xf32> to vector<4x8x32xf32>
    %c0_10 = arith.constant 0 : index
    %c0_11 = arith.constant 0 : index
    %c0_12 = arith.constant 0 : index
    %8 = vector.load %arg5[%c0_10, %c0_11, %c0_12] : memref<2x32x64xf32, #tpu.memory_space<vmem>>, vector<1x32x64xf32>
    %9 = vector.shape_cast %8 : vector<1x32x64xf32> to vector<32x64xf32>
    %c0_13 = arith.constant 0 : index
    %c0_14 = arith.constant 0 : index
    %c0_15 = arith.constant 0 : index
    %10 = vector.load %arg6[%c0_13, %c0_14, %c0_15] : memref<2x64x32xf32, #tpu.memory_space<vmem>>, vector<1x64x32xf32>
    %11 = vector.shape_cast %10 : vector<1x64x32xf32> to vector<64x32xf32>
    %12 = vector.extract_strided_slice %0 {offsets = [16, 0], sizes = [8, 64], strides = [1, 1]} : vector<32x64xf32> to vector<8x64xf32>
    %13 = vector.extract_strided_slice %12 {offsets = [0, 0], sizes = [1, 32], strides = [1, 1]} : vector<8x64xf32> to vector<1x32xf32>
    %14 = vector.extract_strided_slice %12 {offsets = [1, 0], sizes = [1, 32], strides = [1, 1]} : vector<8x64xf32> to vector<1x32xf32>
    %15 = vector.extract_strided_slice %12 {offsets = [2, 0], sizes = [1, 32], strides = [1, 1]} : vector<8x64xf32> to vector<1x32xf32>
    %16 = vector.extract_strided_slice %12 {offsets = [3, 0], sizes = [1, 32], strides = [1, 1]} : vector<8x64xf32> to vector<1x32xf32>
    %17 = vector.extract_strided_slice %12 {offsets = [4, 0], sizes = [1, 32], strides = [1, 1]} : vector<8x64xf32> to vector<1x32xf32>
    %18 = vector.extract_strided_slice %12 {offsets = [5, 0], sizes = [1, 32], strides = [1, 1]} : vector<8x64xf32> to vector<1x32xf32>
    %19 = vector.extract_strided_slice %12 {offsets = [6, 0], sizes = [1, 64], strides = [1, 1]} : vector<8x64xf32> to vector<1x64xf32>
    %cst_16 = arith.constant dense<0.000000e+00> : vector<16x96xf32>
    %20 = tpu.matmul %3, %5, %cst_16 {dimension_numbers = #tpu.dot_dimension_numbers<[1], [0], [0], [1], [0, 0, 1, 1], [], []>} : vector<16x32xf32>, vector<32x96xf32>, vector<16x96xf32> -> vector<16x96xf32>
    %21 = vector.extract_strided_slice %20 {offsets = [0, 0], sizes = [16, 8], strides = [1, 1]} : vector<16x96xf32> to vector<16x8xf32>
    %22 = vector.extract_strided_slice %20 {offsets = [0, 8], sizes = [16, 8], strides = [1, 1]} : vector<16x96xf32> to vector<16x8xf32>
    %23 = vector.extract_strided_slice %20 {offsets = [0, 16], sizes = [16, 8], strides = [1, 1]} : vector<16x96xf32> to vector<16x8xf32>
    %24 = vector.extract_strided_slice %20 {offsets = [0, 24], sizes = [16, 8], strides = [1, 1]} : vector<16x96xf32> to vector<16x8xf32>
    %25 = vector.shape_cast %21 : vector<16x8xf32> to vector<1x16x8xf32>
    %26 = vector.shape_cast %22 : vector<16x8xf32> to vector<1x16x8xf32>
    %27 = vector.shape_cast %23 : vector<16x8xf32> to vector<1x16x8xf32>
    %28 = vector.shape_cast %24 : vector<16x8xf32> to vector<1x16x8xf32>
    %29 = tpu.concatenate %25, %26, %27, %28 in 0 : vector<1x16x8xf32>, vector<1x16x8xf32>, vector<1x16x8xf32>, vector<1x16x8xf32> -> vector<4x16x8xf32>
    %30 = vector.shape_cast %29 : vector<4x16x8xf32> to vector<8x8x8xf32>
    %31 = vector.extract_strided_slice %20 {offsets = [0, 32], sizes = [16, 8], strides = [1, 1]} : vector<16x96xf32> to vector<16x8xf32>
    %32 = vector.extract_strided_slice %20 {offsets = [0, 40], sizes = [16, 8], strides = [1, 1]} : vector<16x96xf32> to vector<16x8xf32>
    %33 = vector.extract_strided_slice %20 {offsets = [0, 48], sizes = [16, 8], strides = [1, 1]} : vector<16x96xf32> to vector<16x8xf32>
    %34 = vector.extract_strided_slice %20 {offsets = [0, 56], sizes = [16, 8], strides = [1, 1]} : vector<16x96xf32> to vector<16x8xf32>
    %35 = vector.shape_cast %31 : vector<16x8xf32> to vector<1x16x8xf32>
    %36 = vector.shape_cast %32 : vector<16x8xf32> to vector<1x16x8xf32>
    %37 = vector.shape_cast %33 : vector<16x8xf32> to vector<1x16x8xf32>
    %38 = vector.shape_cast %34 : vector<16x8xf32> to vector<1x16x8xf32>
    %39 = tpu.concatenate %35, %36, %37, %38 in 0 : vector<1x16x8xf32>, vector<1x16x8xf32>, vector<1x16x8xf32>, vector<1x16x8xf32> -> vector<4x16x8xf32>
    %40 = vector.shape_cast %39 : vector<4x16x8xf32> to vector<8x8x8xf32>
    %41 = vector.extract_strided_slice %20 {offsets = [0, 64], sizes = [16, 8], strides = [1, 1]} : vector<16x96xf32> to vector<16x8xf32>
    %42 = vector.extract_strided_slice %20 {offsets = [0, 72], sizes = [16, 8], strides = [1, 1]} : vector<16x96xf32> to vector<16x8xf32>
    %43 = vector.extract_strided_slice %20 {offsets = [0, 80], sizes = [16, 8], strides = [1, 1]} : vector<16x96xf32> to vector<16x8xf32>
    %44 = vector.extract_strided_slice %20 {offsets = [0, 88], sizes = [16, 8], strides = [1, 1]} : vector<16x96xf32> to vector<16x8xf32>
    %45 = vector.shape_cast %41 : vector<16x8xf32> to vector<1x16x8xf32>
    %46 = vector.shape_cast %42 : vector<16x8xf32> to vector<1x16x8xf32>
    %47 = vector.shape_cast %43 : vector<16x8xf32> to vector<1x16x8xf32>
    %48 = vector.shape_cast %44 : vector<16x8xf32> to vector<1x16x8xf32>
    %49 = tpu.concatenate %45, %46, %47, %48 in 0 : vector<1x16x8xf32>, vector<1x16x8xf32>, vector<1x16x8xf32>, vector<1x16x8xf32> -> vector<4x16x8xf32>
    %50 = vector.shape_cast %49 : vector<4x16x8xf32> to vector<8x8x8xf32>
    "tpu.trace_start"() <{level = 10 : i32, message = "gnd,gmd->gnm"}> : () -> ()
    %cst_17 = arith.constant dense<0.000000e+00> : vector<8x8x8xf32>
    %51 = tpu.matmul %30, %40, %cst_17 {dimension_numbers = #tpu.dot_dimension_numbers<[2], [2], [1], [1], [0, 0, 0, 1, 1, 1], [0], [0]>} : vector<8x8x8xf32>, vector<8x8x8xf32>, vector<8x8x8xf32> -> vector<8x8x8xf32>
    "tpu.trace_stop"() : () -> ()
    %cst_18 = arith.constant dense<0xFF800000> : vector<8x8xf32>
    %52 = vector.multi_reduction <maximumf>, %51, %cst_18 [2] : vector<8x8x8xf32> to vector<8x8xf32>
    %53 = vector.shape_cast %52 : vector<8x8xf32> to vector<8x8x1xf32>
    %54 = vector.broadcast %53 : vector<8x8x1xf32> to vector<8x8x8xf32>
    %55 = arith.subf %51, %54 : vector<8x8x8xf32>
    %56 = math.exp %55 : vector<8x8x8xf32>
    %cst_19 = arith.constant dense<0.000000e+00> : vector<8x8xf32>
    %57 = vector.multi_reduction <add>, %56, %cst_19 [2] : vector<8x8x8xf32> to vector<8x8xf32>
    %58 = vector.shape_cast %57 : vector<8x8xf32> to vector<8x8x1xf32>
    %59 = vector.broadcast %58 : vector<8x8x1xf32> to vector<8x8x8xf32>
    %60 = arith.divf %56, %59 : vector<8x8x8xf32>
    "tpu.trace_start"() <{level = 10 : i32, message = "gnm,gmd->gnd"}> : () -> ()
    %cst_20 = arith.constant dense<0.000000e+00> : vector<8x8x8xf32>
    %61 = tpu.matmul %60, %50, %cst_20 {dimension_numbers = #tpu.dot_dimension_numbers<[2], [1], [1], [2], [0, 0, 0, 1, 1, 2], [0], [0]>} : vector<8x8x8xf32>, vector<8x8x8xf32>, vector<8x8x8xf32> -> vector<8x8x8xf32>
    "tpu.trace_stop"() : () -> ()
    %62 = vector.shape_cast %61 : vector<8x8x8xf32> to vector<4x16x8xf32>
    "tpu.trace_start"() <{level = 10 : i32, message = "hnd,hde->hne"}> : () -> ()
    %cst_21 = arith.constant dense<0.000000e+00> : vector<4x16x32xf32>
    %63 = tpu.matmul %62, %7, %cst_21 {dimension_numbers = #tpu.dot_dimension_numbers<[2], [1], [1], [2], [0, 0, 0, 1, 1, 2], [0], [0]>} : vector<4x16x8xf32>, vector<4x8x32xf32>, vector<4x16x32xf32> -> vector<4x16x32xf32>
    "tpu.trace_stop"() : () -> ()
    %cst_22 = arith.constant dense<0.000000e+00> : vector<16x32xf32>
    %64 = vector.multi_reduction <add>, %63, %cst_22 [0] : vector<4x16x32xf32> to vector<16x32xf32>
    %65 = vector.broadcast %13 : vector<1x32xf32> to vector<16x32xf32>
    %66 = arith.addf %64, %65 : vector<16x32xf32>
    %67 = arith.addf %3, %66 : vector<16x32xf32>
    %68 = vector.shape_cast %67 : vector<16x32xf32> to vector<2x8x32xf32>
    %cst_23 = arith.constant dense<0.000000e+00> : vector<2x32xf32>
    %69 = vector.multi_reduction <add>, %68, %cst_23 [1] : vector<2x8x32xf32> to vector<2x32xf32>
    %70 = vector.shape_cast %69 : vector<2x32xf32> to vector<2x1x32xf32>
    %71 = arith.mulf %68, %68 : vector<2x8x32xf32>
    %cst_24 = arith.constant dense<0.000000e+00> : vector<2x32xf32>
    %72 = vector.multi_reduction <add>, %71, %cst_24 [1] : vector<2x8x32xf32> to vector<2x32xf32>
    %73 = vector.shape_cast %72 : vector<2x32xf32> to vector<2x1x32xf32>
    %cst_25 = arith.constant 1.250000e-01 : f32
    %74 = vector.broadcast %cst_25 : f32 to vector<2x1x32xf32>
    %75 = arith.mulf %70, %74 : vector<2x1x32xf32>
    %cst_26 = arith.constant 1.250000e-01 : f32
    %76 = vector.broadcast %cst_26 : f32 to vector<2x1x32xf32>
    %77 = arith.mulf %73, %76 : vector<2x1x32xf32>
    %78 = arith.mulf %75, %75 : vector<2x1x32xf32>
    %79 = arith.subf %77, %78 : vector<2x1x32xf32>
    %80 = vector.shape_cast %14 : vector<1x32xf32> to vector<1x1x32xf32>
    %cst_27 = arith.constant 9.99999974E-6 : f32
    %81 = vector.broadcast %cst_27 : f32 to vector<2x1x32xf32>
    %82 = arith.addf %79, %81 : vector<2x1x32xf32>
    %83 = math.rsqrt %82 : vector<2x1x32xf32>
    %84 = vector.broadcast %80 : vector<1x1x32xf32> to vector<2x1x32xf32>
    %85 = arith.mulf %84, %83 : vector<2x1x32xf32>
    %86 = vector.shape_cast %15 : vector<1x32xf32> to vector<1x1x32xf32>
    %87 = arith.mulf %75, %85 : vector<2x1x32xf32>
    %88 = vector.broadcast %86 : vector<1x1x32xf32> to vector<2x1x32xf32>
    %89 = arith.subf %88, %87 : vector<2x1x32xf32>
    %90 = vector.broadcast %85 : vector<2x1x32xf32> to vector<2x8x32xf32>
    %91 = arith.mulf %68, %90 : vector<2x8x32xf32>
    %92 = vector.broadcast %89 : vector<2x1x32xf32> to vector<2x8x32xf32>
    %93 = arith.addf %91, %92 : vector<2x8x32xf32>
    %94 = vector.shape_cast %93 : vector<2x8x32xf32> to vector<16x32xf32>
    %cst_28 = arith.constant dense<0.000000e+00> : vector<16x64xf32>
    %95 = tpu.matmul %94, %9, %cst_28 {dimension_numbers = #tpu.dot_dimension_numbers<[1], [0], [0], [1], [0, 0, 1, 1], [], []>} : vector<16x32xf32>, vector<32x64xf32>, vector<16x64xf32> -> vector<16x64xf32>
    %96 = vector.broadcast %19 : vector<1x64xf32> to vector<16x64xf32>
    %97 = arith.addf %95, %96 : vector<16x64xf32>
    %cst_29 = arith.constant 0.000000e+00 : f32
    %98 = vector.broadcast %cst_29 : f32 to vector<16x64xf32>
    %99 = arith.maximumf %97, %98 : vector<16x64xf32>
    %cst_30 = arith.constant dense<0.000000e+00> : vector<16x32xf32>
    %100 = tpu.matmul %99, %11, %cst_30 {dimension_numbers = #tpu.dot_dimension_numbers<[1], [0], [0], [1], [0, 0, 1, 1], [], []>} : vector<16x64xf32>, vector<64x32xf32>, vector<16x32xf32> -> vector<16x32xf32>
    %101 = vector.broadcast %16 : vector<1x32xf32> to vector<16x32xf32>
    %102 = arith.addf %100, %101 : vector<16x32xf32>
    %103 = arith.addf %94, %102 : vector<16x32xf32>
    %104 = vector.shape_cast %103 : vector<16x32xf32> to vector<2x8x32xf32>
    %cst_31 = arith.constant dense<0.000000e+00> : vector<2x32xf32>
    %105 = vector.multi_reduction <add>, %104, %cst_31 [1] : vector<2x8x32xf32> to vector<2x32xf32>
    %106 = vector.shape_cast %105 : vector<2x32xf32> to vector<2x1x32xf32>
    %107 = arith.mulf %104, %104 : vector<2x8x32xf32>
    %cst_32 = arith.constant dense<0.000000e+00> : vector<2x32xf32>
    %108 = vector.multi_reduction <add>, %107, %cst_32 [1] : vector<2x8x32xf32> to vector<2x32xf32>
    %109 = vector.shape_cast %108 : vector<2x32xf32> to vector<2x1x32xf32>
    %cst_33 = arith.constant 1.250000e-01 : f32
    %110 = vector.broadcast %cst_33 : f32 to vector<2x1x32xf32>
    %111 = arith.mulf %106, %110 : vector<2x1x32xf32>
    %cst_34 = arith.constant 1.250000e-01 : f32
    %112 = vector.broadcast %cst_34 : f32 to vector<2x1x32xf32>
    %113 = arith.mulf %109, %112 : vector<2x1x32xf32>
    %114 = arith.mulf %111, %111 : vector<2x1x32xf32>
    %115 = arith.subf %113, %114 : vector<2x1x32xf32>
    %116 = vector.shape_cast %17 : vector<1x32xf32> to vector<1x1x32xf32>
    %cst_35 = arith.constant 9.99999974E-6 : f32
    %117 = vector.broadcast %cst_35 : f32 to vector<2x1x32xf32>
    %118 = arith.addf %115, %117 : vector<2x1x32xf32>
    %119 = math.rsqrt %118 : vector<2x1x32xf32>
    %120 = vector.broadcast %116 : vector<1x1x32xf32> to vector<2x1x32xf32>
    %121 = arith.mulf %120, %119 : vector<2x1x32xf32>
    %122 = vector.shape_cast %18 : vector<1x32xf32> to vector<1x1x32xf32>
    %123 = arith.mulf %111, %121 : vector<2x1x32xf32>
    %124 = vector.broadcast %122 : vector<1x1x32xf32> to vector<2x1x32xf32>
    %125 = arith.subf %124, %123 : vector<2x1x32xf32>
    %126 = vector.broadcast %121 : vector<2x1x32xf32> to vector<2x8x32xf32>
    %127 = arith.mulf %104, %126 : vector<2x8x32xf32>
    %128 = vector.broadcast %125 : vector<2x1x32xf32> to vector<2x8x32xf32>
    %129 = arith.addf %127, %128 : vector<2x8x32xf32>
    %130 = vector.shape_cast %129 : vector<2x8x32xf32> to vector<16x32xf32>
    %c1 = arith.constant 1 : index
    %c0_36 = arith.constant 0 : index
    %c0_37 = arith.constant 0 : index
    %131 = vector.load %arg3[%c1, %c0_36, %c0_37] : memref<2x32x96xf32, #tpu.memory_space<vmem>>, vector<1x32x96xf32>
    %132 = vector.shape_cast %131 : vector<1x32x96xf32> to vector<32x96xf32>
    %c1_38 = arith.constant 1 : index
    %c0_39 = arith.constant 0 : index
    %c0_40 = arith.constant 0 : index
    %c0_41 = arith.constant 0 : index
    %133 = vector.load %arg4[%c1_38, %c0_39, %c0_40, %c0_41] : memref<2x4x8x32xf32, #tpu.memory_space<vmem>>, vector<1x4x8x32xf32>
    %134 = vector.shape_cast %133 : vector<1x4x8x32xf32> to vector<4x8x32xf32>
    %c1_42 = arith.constant 1 : index
    %c0_43 = arith.constant 0 : index
    %c0_44 = arith.constant 0 : index
    %135 = vector.load %arg5[%c1_42, %c0_43, %c0_44] : memref<2x32x64xf32, #tpu.memory_space<vmem>>, vector<1x32x64xf32>
    %136 = vector.shape_cast %135 : vector<1x32x64xf32> to vector<32x64xf32>
    %c1_45 = arith.constant 1 : index
    %c0_46 = arith.constant 0 : index
    %c0_47 = arith.constant 0 : index
    %137 = vector.load %arg6[%c1_45, %c0_46, %c0_47] : memref<2x64x32xf32, #tpu.memory_space<vmem>>, vector<1x64x32xf32>
    %138 = vector.shape_cast %137 : vector<1x64x32xf32> to vector<64x32xf32>
    %139 = vector.extract_strided_slice %0 {offsets = [24, 0], sizes = [8, 64], strides = [1, 1]} : vector<32x64xf32> to vector<8x64xf32>
    %140 = vector.extract_strided_slice %139 {offsets = [0, 0], sizes = [1, 32], strides = [1, 1]} : vector<8x64xf32> to vector<1x32xf32>
    %141 = vector.extract_strided_slice %139 {offsets = [1, 0], sizes = [1, 32], strides = [1, 1]} : vector<8x64xf32> to vector<1x32xf32>
    %142 = vector.extract_strided_slice %139 {offsets = [2, 0], sizes = [1, 32], strides = [1, 1]} : vector<8x64xf32> to vector<1x32xf32>
    %143 = vector.extract_strided_slice %139 {offsets = [3, 0], sizes = [1, 32], strides = [1, 1]} : vector<8x64xf32> to vector<1x32xf32>
    %144 = vector.extract_strided_slice %139 {offsets = [4, 0], sizes = [1, 32], strides = [1, 1]} : vector<8x64xf32> to vector<1x32xf32>
    %145 = vector.extract_strided_slice %139 {offsets = [5, 0], sizes = [1, 32], strides = [1, 1]} : vector<8x64xf32> to vector<1x32xf32>
    %146 = vector.extract_strided_slice %139 {offsets = [6, 0], sizes = [1, 64], strides = [1, 1]} : vector<8x64xf32> to vector<1x64xf32>
    %cst_48 = arith.constant dense<0.000000e+00> : vector<16x96xf32>
    %147 = tpu.matmul %130, %132, %cst_48 {dimension_numbers = #tpu.dot_dimension_numbers<[1], [0], [0], [1], [0, 0, 1, 1], [], []>} : vector<16x32xf32>, vector<32x96xf32>, vector<16x96xf32> -> vector<16x96xf32>
    %148 = vector.extract_strided_slice %147 {offsets = [0, 0], sizes = [16, 8], strides = [1, 1]} : vector<16x96xf32> to vector<16x8xf32>
    %149 = vector.extract_strided_slice %147 {offsets = [0, 8], sizes = [16, 8], strides = [1, 1]} : vector<16x96xf32> to vector<16x8xf32>
    %150 = vector.extract_strided_slice %147 {offsets = [0, 16], sizes = [16, 8], strides = [1, 1]} : vector<16x96xf32> to vector<16x8xf32>
    %151 = vector.extract_strided_slice %147 {offsets = [0, 24], sizes = [16, 8], strides = [1, 1]} : vector<16x96xf32> to vector<16x8xf32>
    %152 = vector.shape_cast %148 : vector<16x8xf32> to vector<1x16x8xf32>
    %153 = vector.shape_cast %149 : vector<16x8xf32> to vector<1x16x8xf32>
    %154 = vector.shape_cast %150 : vector<16x8xf32> to vector<1x16x8xf32>
    %155 = vector.shape_cast %151 : vector<16x8xf32> to vector<1x16x8xf32>
    %156 = tpu.concatenate %152, %153, %154, %155 in 0 : vector<1x16x8xf32>, vector<1x16x8xf32>, vector<1x16x8xf32>, vector<1x16x8xf32> -> vector<4x16x8xf32>
    %157 = vector.shape_cast %156 : vector<4x16x8xf32> to vector<8x8x8xf32>
    %158 = vector.extract_strided_slice %147 {offsets = [0, 32], sizes = [16, 8], strides = [1, 1]} : vector<16x96xf32> to vector<16x8xf32>
    %159 = vector.extract_strided_slice %147 {offsets = [0, 40], sizes = [16, 8], strides = [1, 1]} : vector<16x96xf32> to vector<16x8xf32>
    %160 = vector.extract_strided_slice %147 {offsets = [0, 48], sizes = [16, 8], strides = [1, 1]} : vector<16x96xf32> to vector<16x8xf32>
    %161 = vector.extract_strided_slice %147 {offsets = [0, 56], sizes = [16, 8], strides = [1, 1]} : vector<16x96xf32> to vector<16x8xf32>
    %162 = vector.shape_cast %158 : vector<16x8xf32> to vector<1x16x8xf32>
    %163 = vector.shape_cast %159 : vector<16x8xf32> to vector<1x16x8xf32>
    %164 = vector.shape_cast %160 : vector<16x8xf32> to vector<1x16x8xf32>
    %165 = vector.shape_cast %161 : vector<16x8xf32> to vector<1x16x8xf32>
    %166 = tpu.concatenate %162, %163, %164, %165 in 0 : vector<1x16x8xf32>, vector<1x16x8xf32>, vector<1x16x8xf32>, vector<1x16x8xf32> -> vector<4x16x8xf32>
    %167 = vector.shape_cast %166 : vector<4x16x8xf32> to vector<8x8x8xf32>
    %168 = vector.extract_strided_slice %147 {offsets = [0, 64], sizes = [16, 8], strides = [1, 1]} : vector<16x96xf32> to vector<16x8xf32>
    %169 = vector.extract_strided_slice %147 {offsets = [0, 72], sizes = [16, 8], strides = [1, 1]} : vector<16x96xf32> to vector<16x8xf32>
    %170 = vector.extract_strided_slice %147 {offsets = [0, 80], sizes = [16, 8], strides = [1, 1]} : vector<16x96xf32> to vector<16x8xf32>
    %171 = vector.extract_strided_slice %147 {offsets = [0, 88], sizes = [16, 8], strides = [1, 1]} : vector<16x96xf32> to vector<16x8xf32>
    %172 = vector.shape_cast %168 : vector<16x8xf32> to vector<1x16x8xf32>
    %173 = vector.shape_cast %169 : vector<16x8xf32> to vector<1x16x8xf32>
    %174 = vector.shape_cast %170 : vector<16x8xf32> to vector<1x16x8xf32>
    %175 = vector.shape_cast %171 : vector<16x8xf32> to vector<1x16x8xf32>
    %176 = tpu.concatenate %172, %173, %174, %175 in 0 : vector<1x16x8xf32>, vector<1x16x8xf32>, vector<1x16x8xf32>, vector<1x16x8xf32> -> vector<4x16x8xf32>
    %177 = vector.shape_cast %176 : vector<4x16x8xf32> to vector<8x8x8xf32>
    "tpu.trace_start"() <{level = 10 : i32, message = "gnd,gmd->gnm"}> : () -> ()
    %cst_49 = arith.constant dense<0.000000e+00> : vector<8x8x8xf32>
    %178 = tpu.matmul %157, %167, %cst_49 {dimension_numbers = #tpu.dot_dimension_numbers<[2], [2], [1], [1], [0, 0, 0, 1, 1, 1], [0], [0]>} : vector<8x8x8xf32>, vector<8x8x8xf32>, vector<8x8x8xf32> -> vector<8x8x8xf32>
    "tpu.trace_stop"() : () -> ()
    %cst_50 = arith.constant dense<0xFF800000> : vector<8x8xf32>
    %179 = vector.multi_reduction <maximumf>, %178, %cst_50 [2] : vector<8x8x8xf32> to vector<8x8xf32>
    %180 = vector.shape_cast %179 : vector<8x8xf32> to vector<8x8x1xf32>
    %181 = vector.broadcast %180 : vector<8x8x1xf32> to vector<8x8x8xf32>
    %182 = arith.subf %178, %181 : vector<8x8x8xf32>
    %183 = math.exp %182 : vector<8x8x8xf32>
    %cst_51 = arith.constant dense<0.000000e+00> : vector<8x8xf32>
    %184 = vector.multi_reduction <add>, %183, %cst_51 [2] : vector<8x8x8xf32> to vector<8x8xf32>
    %185 = vector.shape_cast %184 : vector<8x8xf32> to vector<8x8x1xf32>
    %186 = vector.broadcast %185 : vector<8x8x1xf32> to vector<8x8x8xf32>
    %187 = arith.divf %183, %186 : vector<8x8x8xf32>
    "tpu.trace_start"() <{level = 10 : i32, message = "gnm,gmd->gnd"}> : () -> ()
    %cst_52 = arith.constant dense<0.000000e+00> : vector<8x8x8xf32>
    %188 = tpu.matmul %187, %177, %cst_52 {dimension_numbers = #tpu.dot_dimension_numbers<[2], [1], [1], [2], [0, 0, 0, 1, 1, 2], [0], [0]>} : vector<8x8x8xf32>, vector<8x8x8xf32>, vector<8x8x8xf32> -> vector<8x8x8xf32>
    "tpu.trace_stop"() : () -> ()
    %189 = vector.shape_cast %188 : vector<8x8x8xf32> to vector<4x16x8xf32>
    "tpu.trace_start"() <{level = 10 : i32, message = "hnd,hde->hne"}> : () -> ()
    %cst_53 = arith.constant dense<0.000000e+00> : vector<4x16x32xf32>
    %190 = tpu.matmul %189, %134, %cst_53 {dimension_numbers = #tpu.dot_dimension_numbers<[2], [1], [1], [2], [0, 0, 0, 1, 1, 2], [0], [0]>} : vector<4x16x8xf32>, vector<4x8x32xf32>, vector<4x16x32xf32> -> vector<4x16x32xf32>
    "tpu.trace_stop"() : () -> ()
    %cst_54 = arith.constant dense<0.000000e+00> : vector<16x32xf32>
    %191 = vector.multi_reduction <add>, %190, %cst_54 [0] : vector<4x16x32xf32> to vector<16x32xf32>
    %192 = vector.broadcast %140 : vector<1x32xf32> to vector<16x32xf32>
    %193 = arith.addf %191, %192 : vector<16x32xf32>
    %194 = arith.addf %130, %193 : vector<16x32xf32>
    %195 = vector.shape_cast %194 : vector<16x32xf32> to vector<2x8x32xf32>
    %cst_55 = arith.constant dense<0.000000e+00> : vector<2x32xf32>
    %196 = vector.multi_reduction <add>, %195, %cst_55 [1] : vector<2x8x32xf32> to vector<2x32xf32>
    %197 = vector.shape_cast %196 : vector<2x32xf32> to vector<2x1x32xf32>
    %198 = arith.mulf %195, %195 : vector<2x8x32xf32>
    %cst_56 = arith.constant dense<0.000000e+00> : vector<2x32xf32>
    %199 = vector.multi_reduction <add>, %198, %cst_56 [1] : vector<2x8x32xf32> to vector<2x32xf32>
    %200 = vector.shape_cast %199 : vector<2x32xf32> to vector<2x1x32xf32>
    %cst_57 = arith.constant 1.250000e-01 : f32
    %201 = vector.broadcast %cst_57 : f32 to vector<2x1x32xf32>
    %202 = arith.mulf %197, %201 : vector<2x1x32xf32>
    %cst_58 = arith.constant 1.250000e-01 : f32
    %203 = vector.broadcast %cst_58 : f32 to vector<2x1x32xf32>
    %204 = arith.mulf %200, %203 : vector<2x1x32xf32>
    %205 = arith.mulf %202, %202 : vector<2x1x32xf32>
    %206 = arith.subf %204, %205 : vector<2x1x32xf32>
    %207 = vector.shape_cast %141 : vector<1x32xf32> to vector<1x1x32xf32>
    %cst_59 = arith.constant 9.99999974E-6 : f32
    %208 = vector.broadcast %cst_59 : f32 to vector<2x1x32xf32>
    %209 = arith.addf %206, %208 : vector<2x1x32xf32>
    %210 = math.rsqrt %209 : vector<2x1x32xf32>
    %211 = vector.broadcast %207 : vector<1x1x32xf32> to vector<2x1x32xf32>
    %212 = arith.mulf %211, %210 : vector<2x1x32xf32>
    %213 = vector.shape_cast %142 : vector<1x32xf32> to vector<1x1x32xf32>
    %214 = arith.mulf %202, %212 : vector<2x1x32xf32>
    %215 = vector.broadcast %213 : vector<1x1x32xf32> to vector<2x1x32xf32>
    %216 = arith.subf %215, %214 : vector<2x1x32xf32>
    %217 = vector.broadcast %212 : vector<2x1x32xf32> to vector<2x8x32xf32>
    %218 = arith.mulf %195, %217 : vector<2x8x32xf32>
    %219 = vector.broadcast %216 : vector<2x1x32xf32> to vector<2x8x32xf32>
    %220 = arith.addf %218, %219 : vector<2x8x32xf32>
    %221 = vector.shape_cast %220 : vector<2x8x32xf32> to vector<16x32xf32>
    %cst_60 = arith.constant dense<0.000000e+00> : vector<16x64xf32>
    %222 = tpu.matmul %221, %136, %cst_60 {dimension_numbers = #tpu.dot_dimension_numbers<[1], [0], [0], [1], [0, 0, 1, 1], [], []>} : vector<16x32xf32>, vector<32x64xf32>, vector<16x64xf32> -> vector<16x64xf32>
    %223 = vector.broadcast %146 : vector<1x64xf32> to vector<16x64xf32>
    %224 = arith.addf %222, %223 : vector<16x64xf32>
    %cst_61 = arith.constant 0.000000e+00 : f32
    %225 = vector.broadcast %cst_61 : f32 to vector<16x64xf32>
    %226 = arith.maximumf %224, %225 : vector<16x64xf32>
    %cst_62 = arith.constant dense<0.000000e+00> : vector<16x32xf32>
    %227 = tpu.matmul %226, %138, %cst_62 {dimension_numbers = #tpu.dot_dimension_numbers<[1], [0], [0], [1], [0, 0, 1, 1], [], []>} : vector<16x64xf32>, vector<64x32xf32>, vector<16x32xf32> -> vector<16x32xf32>
    %228 = vector.broadcast %143 : vector<1x32xf32> to vector<16x32xf32>
    %229 = arith.addf %227, %228 : vector<16x32xf32>
    %230 = arith.addf %221, %229 : vector<16x32xf32>
    %231 = vector.shape_cast %230 : vector<16x32xf32> to vector<2x8x32xf32>
    %cst_63 = arith.constant dense<0.000000e+00> : vector<2x32xf32>
    %232 = vector.multi_reduction <add>, %231, %cst_63 [1] : vector<2x8x32xf32> to vector<2x32xf32>
    %233 = vector.shape_cast %232 : vector<2x32xf32> to vector<2x1x32xf32>
    %234 = arith.mulf %231, %231 : vector<2x8x32xf32>
    %cst_64 = arith.constant dense<0.000000e+00> : vector<2x32xf32>
    %235 = vector.multi_reduction <add>, %234, %cst_64 [1] : vector<2x8x32xf32> to vector<2x32xf32>
    %236 = vector.shape_cast %235 : vector<2x32xf32> to vector<2x1x32xf32>
    %cst_65 = arith.constant 1.250000e-01 : f32
    %237 = vector.broadcast %cst_65 : f32 to vector<2x1x32xf32>
    %238 = arith.mulf %233, %237 : vector<2x1x32xf32>
    %cst_66 = arith.constant 1.250000e-01 : f32
    %239 = vector.broadcast %cst_66 : f32 to vector<2x1x32xf32>
    %240 = arith.mulf %236, %239 : vector<2x1x32xf32>
    %241 = arith.mulf %238, %238 : vector<2x1x32xf32>
    %242 = arith.subf %240, %241 : vector<2x1x32xf32>
    %243 = vector.shape_cast %144 : vector<1x32xf32> to vector<1x1x32xf32>
    %cst_67 = arith.constant 9.99999974E-6 : f32
    %244 = vector.broadcast %cst_67 : f32 to vector<2x1x32xf32>
    %245 = arith.addf %242, %244 : vector<2x1x32xf32>
    %246 = math.rsqrt %245 : vector<2x1x32xf32>
    %247 = vector.broadcast %243 : vector<1x1x32xf32> to vector<2x1x32xf32>
    %248 = arith.mulf %247, %246 : vector<2x1x32xf32>
    %249 = vector.shape_cast %145 : vector<1x32xf32> to vector<1x1x32xf32>
    %250 = arith.mulf %238, %248 : vector<2x1x32xf32>
    %251 = vector.broadcast %249 : vector<1x1x32xf32> to vector<2x1x32xf32>
    %252 = arith.subf %251, %250 : vector<2x1x32xf32>
    %253 = vector.broadcast %248 : vector<2x1x32xf32> to vector<2x8x32xf32>
    %254 = arith.mulf %231, %253 : vector<2x8x32xf32>
    %255 = vector.broadcast %252 : vector<2x1x32xf32> to vector<2x8x32xf32>
    %256 = arith.addf %254, %255 : vector<2x8x32xf32>
    %257 = vector.shape_cast %256 : vector<2x8x32xf32> to vector<16x32xf32>
    %c0_68 = arith.constant 0 : index
    %c0_69 = arith.constant 0 : index
    %258 = vector.load %arg7[%c0_68, %c0_69] : memref<16x32xf32, #tpu.memory_space<vmem>>, vector<16x32xf32>
    tpu.vector_store %arg7[%c0_68, %c0_69], %257 {strides = array<i32>} : memref<16x32xf32, #tpu.memory_space<vmem>>, vector<16x32xf32>,
    return
  }
  func.func @transform_0(%arg0: i32) -> (i32, i32) {
    %c0_i32 = arith.constant 0 : i32
    %c0_i32_0 = arith.constant 0 : i32
    %c0_i32_1 = arith.constant 0 : i32
    return %c0_i32, %c0_i32_0 : i32, i32
  }
  func.func @transform_1(%arg0: i32) -> (i32, i32) {
    %c0_i32 = arith.constant 0 : i32
    %c0_i32_0 = arith.constant 0 : i32
    %c0_i32_1 = arith.constant 0 : i32
    return %c0_i32, %c0_i32_0 : i32, i32
  }
  func.func @transform_2(%arg0: i32) -> (i32, i32, i32) {
    %c0_i32 = arith.constant 0 : i32
    %c0_i32_0 = arith.constant 0 : i32
    %c0_i32_1 = arith.constant 0 : i32
    %c0_i32_2 = arith.constant 0 : i32
    return %c0_i32, %c0_i32_0, %c0_i32_1 : i32, i32, i32
  }
  func.func @transform_3(%arg0: i32) -> (i32, i32, i32, i32) {
    %c0_i32 = arith.constant 0 : i32
    %c0_i32_0 = arith.constant 0 : i32
    %c0_i32_1 = arith.constant 0 : i32
    %c0_i32_2 = arith.constant 0 : i32
    %c0_i32_3 = arith.constant 0 : i32
    return %c0_i32, %c0_i32_0, %c0_i32_1, %c0_i32_2 : i32, i32, i32, i32
  }
  func.func @transform_4(%arg0: i32) -> (i32, i32, i32) {
    %c0_i32 = arith.constant 0 : i32
    %c0_i32_0 = arith.constant 0 : i32
    %c0_i32_1 = arith.constant 0 : i32
    %c0_i32_2 = arith.constant 0 : i32
    return %c0_i32, %c0_i32_0, %c0_i32_1 : i32, i32, i32
  }
  func.func @transform_5(%arg0: i32) -> (i32, i32, i32) {
    %c0_i32 = arith.constant 0 : i32
    %c0_i32_0 = arith.constant 0 : i32
    %c0_i32_1 = arith.constant 0 : i32
    %c0_i32_2 = arith.constant 0 : i32
    return %c0_i32, %c0_i32_0, %c0_i32_1 : i32, i32, i32
  }
  func.func @transform_6(%arg0: i32) -> (i32, i32) {
    %c0_i32 = arith.constant 0 : i32
    %c0_i32_0 = arith.constant 0 : i32
    %c0_i32_1 = arith.constant 0 : i32
    return %c0_i32, %c0_i32_0 : i32, i32
  }
}

</mosaic_0001>

<bundles_post_ra>
// kernel: ophssp_encoder.1
= control target key start
LH: loop header
LB: loop body
LE: loop exit
PB: predicated region body
PF: predicated region fallthrough
CT: control target
= control target key end

     0   :  { %11 = vsyncpa [#allocation3], 0  ;;  %s5773_s0 = inlined_call_operand.vmem [shape: f32[16,16], index: 0, kind: input, shape index: {}]   ;;  %s5774_s1 = inlined_call_operand.hbm [shape: f32[32,64], index: 1, kind: input, shape index: {}]   ;;  %s5775_s2 = inlined_call_operand.hbm [shape: f32[2,32,96], index: 2, kind: input, shape index: {}]   ;;  %s5776_s3 = inlined_call_operand.vmem [shape: f32[2,4,8,32], index: 3, kind: input, shape index: {}]   ;;  %s5777_s4 = inlined_call_operand.vmem [shape: f32[2,32,64], index: 4, kind: input, shape index: {}]   ;;  %s5778_s5 = inlined_call_operand.vmem [shape: f32[2,64,32], index: 5, kind: input, shape index: {}]   ;;  %s5779_s6 = inlined_call_operand.hbm [shape: f32[16,32], index: 6, kind: output, shape index: {}]  }
   0x1   :  { %12 = vsyncpa [#allocation6], 0 }
   0x2   :  { %13 = vsyncpa [#allocation4], 0  ;;  %s5092_s21 = smov [#allocation2]   ;;  %s5020_s25 = scalar_lea.hbm %s5774_s1, 512 }
   0x3   :  { %s21_s22 = sshll.u32 %s5092_s21, 4  ;;  %p5021_p0 = scmp.ne.s32.totalorder %s5774_s1, %s5020_s25  ;;  %s22_s22 = int_to_ptr.vmem [resolvable:$true] %s21_s22 }
   0x4   :  { %p5024_p1 = scmp.lt.u32.totalorder %s5020_s25, %s5774_s1 }
   0x6   :  { %p5026_p2 = pnand %p5024_p1, %p5021_p0 }
   0x8   :  { %5029 = shalt.err (!%p5026_p2)
}
   0x9   :  { %s5030_s30 = scalar_lea.vmem %s22_s22, 512  ;;  %p5035_p4 = scmp.lt.s32.totalorder %s22_s22, %s22_s22 }
   0xa   :  { %p5031_p3 = scmp.ne.s32.totalorder %s22_s22, %s5030_s30  ;;  %p5036_p5 = scmp.lt.s32.totalorder %s5030_s30, %s5030_s30 }
   0xc   :  { %p5037_p6 = por %p5036_p5, %p5035_p4 }
   0xe   :  { %p5038_p7 = pnand %p5037_p6, %p5031_p3 }
  0x10   :  { %5041 = shalt.err (!%p5038_p7)
}
  0x11   :  { %s5093_s7 = smov 128   ;;  %s5094_s8 = smov 8  }
  0x12   :  { %27 = dma.hbm_to_vmem [thread:$0]  %s5774_s1, 512, %s22_s22, [#allocation3], %s5093_s7, %s5093_s7, %s5094_s8  }
  0x13   :  { %s5095_s11 = smov [#allocation5]   ;;  %s5042_s15 = scalar_lea.hbm %s5775_s2, 1024 }
  0x14   :  { %s33_s12 = sshll.u32 %s5095_s11, 4  ;;  %p5043_p8 = scmp.ne.s32.totalorder %s5775_s2, %s5042_s15  ;;  %s34_s12 = int_to_ptr.vmem [resolvable:$true] %s33_s12 }
  0x15   :  { %p5046_p9 = scmp.lt.u32.totalorder %s5042_s15, %s5775_s2 }
  0x17   :  { %p5048_p10 = pnand %p5046_p9, %p5043_p8 }
  0x19   :  { %5051 = shalt.err (!%p5048_p10)
}
  0x1a   :  { %s5052_s20 = scalar_lea.vmem %s34_s12, 1024  ;;  %p5057_p12 = scmp.lt.s32.totalorder %s34_s12, %s34_s12 }
  0x1b   :  { %p5053_p11 = scmp.ne.s32.totalorder %s34_s12, %s5052_s20  ;;  %p5058_p13 = scmp.lt.s32.totalorder %s5052_s20, %s5052_s20 }
  0x1d   :  { %p5059_p0 = por %p5058_p13, %p5057_p12 }
  0x1f   :  { %p5060_p1 = pnand %p5059_p0, %p5053_p11 }
  0x21   :  { %5063 = shalt.err (!%p5060_p1)
}
  0x22   :  { %39 = dma.hbm_to_vmem [thread:$0]  %s5775_s2, 1024, %s34_s12, [#allocation6], %s5093_s7, %s5093_s7, %s5094_s8  }
  0x23   :  { %5086 = dma.done.wait [#allocation3], 512  }
  0x24   :  { %5087 = vsyncadd [#allocation3], 4294966784 }
  0x25   :  { %5088 = dma.done.wait [#allocation6], 1024  }
  0x26   :  { %5089 = vsyncadd [#allocation6], 4294966272  ;;  %vm58_vm0 = vcmask 130048   ;;  %v52_v0 = vld [vmem:[#allocation2] sm:$0xff]  ;;  %v53_v1 = vld [vmem:[#allocation2 + $0x8] sm:$0xff]  ;;  %vm160_vm1 = vcmask 261120  }
  0x27   :  { %v56_v2 = vld [vmem:[%s5773_s0] sm:$0xff]  ;;  %v4860_v3 = vpack.c.bf16 %v53_v1, %v52_v0  ;;  %v141_v5 = vld [vmem:[#allocation5 + $0x8] sm:$0xff]  ;;  %v142_v7 = vld [vmem:[#allocation5 + $0x10] sm:$0xff]  ;;  %v5096_v13 = vmov 0.0   ;;  %s5098_s25 = smov 120   ;;  %vm5099_vm2 = vmmov 0  }
  0x28   :  { %4575 = vmatprep.mubr.msk.f32.mxu1 %vm58_vm0, %v56_v2  ;;  %v140_v4 = vld [vmem:[#allocation5] sm:$0xff]  ;;  %v143_v8 = vld [vmem:[#allocation5 + $0x18] sm:$0xff]  ;;  %v57_v9 = vld [vmem:[%s5773_s0 + $0x8] sm:$0xff]  ;;  %4589 = vmatprep.subr.mxu0 %v5096_v13  ;;  %s5097_s0 = smov 112   ;;  %s5100_s26 = smov 104   ;;  %vm258_vm3 = vcmask 64512  }
  0x29   :  { %v4864_v6 = vpack.c.bf16 %v141_v5, %v140_v4  ;;  %4861 = vmatprep.subr.bf16.mxu1 %v4860_v3  ;;  %v4868_v10 = vpack.c.bf16 %v143_v8, %v142_v7  ;;  %4591 = vmatprep.mubr.msk.f32.mxu0 %vm5099_vm2, %v5096_v13  ;;  %s5101_s27 = smov 96   ;;  %s5102_s28 = smov 64   ;;  %vm2072_vm4 = vcmask 523264  }
  0x2a   :  { %4863 = vmatpush3.bf16.msra.mxu1 %v4860_v3 }
  0x2b   :  { %4865 = vmatprep.subr.bf16.mxu1 %v4864_v6 }
  0x2d   :  { %4576 = vmatmul.mubr.msk.f32.vlgmr.msra.gmra.mrb[0].mxu1 %vm58_vm0, %v57_v9 }
  0x2e   :  { %4867 = vmatpush3.bf16.msra.mxu1 %v4864_v6 }
  0x2f   :  { %4869 = vmatprep.subr.bf16.mxu1 %v4868_v10 }
  0x32   :  { %4871 = vmatpush3.bf16.msra.mxu1 %v4868_v10 }
  0x33   :  { %4599 = vmatprep.subr.mxu1 %v5096_v13 }
 0x100   :  { %v5177_v11 = vpop.f32.mrb[0].mxu1 }
 0x101   :  { %v5179_v12 = vpop.f32.mrb[1].mxu1 }
 0x102   :  { %4586 = vmatprep.mubr.msk.f32.mxu1 %vm160_vm1, %v5179_v12 }
 0x103   :  { %4587 = vmatmul.mubr.msk.f32.vlgmr.msra.gmra.mrb[2].mxu1 %vm160_vm1, %v5177_v11 }
 0x104   :  { %4601 = vmatprep.mubr.msk.f32.mxu1 %vm5099_vm2, %v5096_v13 }
 0x1d6   :  { %v5187_v14 = vpop.f32.mrb[2].mxu1 }
 0x1d7   :  { %v5189_v15 = vpop.f32.mrb[3].mxu1 }
 0x1d8   :  { %248 = vrot.lane.b32.xlu1 %v5189_v15, %s5097_s0  ;;  %244 = vrot.lane.b32.xlu0 %v5189_v15, %s5098_s25 }
 0x1dc   :  { %250 = vrot.lane.b32.xlu1 %v5187_v14, %s5097_s0  ;;  %246 = vrot.lane.b32.xlu0 %v5187_v14, %s5098_s25 }
 0x1e0   :  { %254 = vrot.lane.b32.xlu1 %v5187_v14, %s5100_s26  ;;  %252 = vrot.lane.b32.xlu0 %v5189_v15, %s5100_s26 }
 0x1e4   :  { %333 = vrot.lane.b32.xlu1 %v5187_v14, %s5101_s27  ;;  %256 = vrot.lane.b32.xlu0 %v5189_v15, %s5101_s27 }
 0x24a   :  { %v5211_v16 = vpop.permute.xlu1 %248  ;;  %v5213_v17 = vpop.permute.xlu0 %244 }
 0x24b   :  { %409 = vrot.lane.b32.xlu0 %v5213_v17, %s5101_s27 }
 0x24e   :  { %v5217_v18 = vpop.permute.xlu1 %250  ;;  %v5219_v19 = vpop.permute.xlu0 %246 }
 0x24f   :  { %561 = vrot.lane.b32.xlu0 %v5211_v16, %s5101_s27  ;;  %485 = vrot.lane.b32.xlu1 %v5219_v19, %s5101_s27 }
 0x252   :  { %v5225_v20 = vpop.permute.xlu0 %252  ;;  %v5231_v21 = vpop.permute.xlu1 %254 }
 0x253   :  { %637 = vrot.lane.b32.xlu1 %v5217_v18, %s5101_s27  ;;  %713 = vrot.lane.b32.xlu0 %v5225_v20, %s5101_s27 }
 0x256   :  { %v257_v22 = vpop.permute.xlu0 %256  ;;  %v334_v23 = vpop.permute.xlu1 %333 }
 0x257   :  { %789 = vrot.lane.b32.xlu1 %v5231_v21, %s5101_s27  ;;  %4590 = vmatpush3.xpose.msk.msra.mxu0 %vm258_vm3, %v257_v22 }
 0x258   :  { %4594 = vmatprep.subr.mxu0 %v5096_v13 }
 0x25a   :  { %4592 = vmatmul.mubr.msk.f32.vlgmr.msra.gmra.mrb[0].mxu0 %vm258_vm3, %v5189_v15 }
 0x25b   :  { %4595 = vmatpush3.xpose.msk.msra.mxu0 %vm258_vm3, %v334_v23  ;;  %4596 = vmatprep.mubr.msk.f32.mxu0 %vm5099_vm2, %v5096_v13 }
 0x25c   :  { %4604 = vmatprep.subr.mxu0 %v5096_v13 }
 0x25e   :  { %4597 = vmatmul.mubr.msk.f32.vlgmr.msra.gmra.mrb[2].mxu0 %vm258_vm3, %v5187_v14 }
 0x25f   :  { %4606 = vmatprep.mubr.msk.f32.mxu0 %vm5099_vm2, %v5096_v13 }
 0x2bd   :  { %v410_v24 = vpop.permute.xlu0 %409 }
 0x2be   :  { %4600 = vmatpush3.xpose.msk.msra.mxu1 %vm258_vm3, %v410_v24 }
 0x2bf   :  { %4609 = vmatprep.subr.mxu1 %v5096_v13 }
 0x2c1   :  { %v486_v25 = vpop.permute.xlu1 %485  ;;  %4602 = vmatmul.mubr.msk.f32.vlgmr.msra.gmra.mrb[4].mxu1 %vm258_vm3, %v5213_v17  ;;  %v562_v26 = vpop.permute.xlu0 %561 }
 0x2c2   :  { %4605 = vmatpush3.xpose.msk.msra.mxu0 %vm258_vm3, %v486_v25  ;;  %4610 = vmatpush3.xpose.msk.msra.mxu1 %vm258_vm3, %v562_v26 }
 0x2c3   :  { %4611 = vmatprep.mubr.msk.f32.mxu1 %vm5099_vm2, %v5096_v13  ;;  %4614 = vmatprep.subr.mxu0 %v5096_v13 }
 0x2c4   :  { %4619 = vmatprep.subr.mxu1 %v5096_v13 }
 0x2c5   :  { %v638_v27 = vpop.permute.xlu1 %637  ;;  %4607 = vmatmul.mubr.msk.f32.vlgmr.msra.gmra.mrb[4].mxu0 %vm258_vm3, %v5219_v19  ;;  %4612 = vmatmul.mubr.msk.f32.vlgmr.msra.gmra.mrb[6].mxu1 %vm258_vm3, %v5211_v16  ;;  %v714_v28 = vpop.permute.xlu0 %713 }
 0x2c6   :  { %4615 = vmatpush3.xpose.msk.msra.mxu0 %vm258_vm3, %v638_v27  ;;  %4620 = vmatpush3.xpose.msk.msra.mxu1 %vm258_vm3, %v714_v28 }
 0x2c7   :  { %4616 = vmatprep.mubr.msk.f32.mxu0 %vm5099_vm2, %v5096_v13  ;;  %4621 = vmatprep.mubr.msk.f32.mxu1 %vm5099_vm2, %v5096_v13 }
 0x2c8   :  { %4624 = vmatprep.subr.mxu0 %v5096_v13  ;;  %4629 = vmatprep.subr.mxu1 %v5096_v13 }
 0x2c9   :  { %v790_v29 = vpop.permute.xlu1 %789  ;;  %4617 = vmatmul.mubr.msk.f32.vlgmr.msra.gmra.mrb[6].mxu0 %vm258_vm3, %v5217_v18  ;;  %4622 = vmatmul.mubr.msk.f32.vlgmr.msra.gmra.mrb[8].mxu1 %vm258_vm3, %v5225_v20 }
 0x2ca   :  { %4625 = vmatpush3.xpose.msk.msra.mxu0 %vm258_vm3, %v790_v29  ;;  %4626 = vmatprep.mubr.msk.f32.mxu0 %vm5099_vm2, %v5096_v13 }
 0x2cb   :  { %4634 = vmatprep.subr.mxu0 %v5096_v13  ;;  %4631 = vmatprep.mubr.msk.f32.mxu1 %vm5099_vm2, %v5096_v13 }
 0x2cd   :  { %4627 = vmatmul.mubr.msk.f32.vlgmr.msra.gmra.mrb[8].mxu0 %vm258_vm3, %v5231_v21 }
 0x2ce   :  { %4636 = vmatprep.mubr.msk.f32.mxu0 %vm5099_vm2, %v5096_v13 }
 0x32d   :  { %v329_v30 = vpop.f32.mrb[0].mxu0 }
 0x32e   :  { %v4593_v31 = vpop.f32.mrb[1].mxu0  ;;  %v865_v32 = vsel %vm258_vm3, %v329_v30, -inf }
 0x32f   :  { %866 = vmax.xlane.f32.xlu0 %v865_v32 }
 0x331   :  { %v405_v33 = vpop.f32.mrb[2].mxu0 }
 0x332   :  { %v4598_v34 = vpop.f32.mrb[3].mxu0  ;;  %v868_v35 = vsel %vm258_vm3, %v405_v33, -inf }
 0x333   :  { %869 = vmax.xlane.f32.xlu1 %v868_v35 }
 0x394   :  { %v481_v36 = vpop.f32.mrb[4].mxu1 }
 0x395   :  { %v4603_v37 = vpop.f32.mrb[5].mxu1  ;;  %v871_v38 = vsel %vm258_vm3, %v481_v36, -inf }
 0x396   :  { %872 = vmax.xlane.f32.xlu0 %v871_v38 }
 0x398   :  { %v557_v39 = vpop.f32.mrb[4].mxu0  ;;  %v633_v40 = vpop.f32.mrb[6].mxu1 }
 0x399   :  { %v4608_v41 = vpop.f32.mrb[5].mxu0  ;;  %v4613_v42 = vpop.f32.mrb[7].mxu1  ;;  %v874_v43 = vsel %vm258_vm3, %v557_v39, -inf  ;;  %v877_v44 = vsel %vm258_vm3, %v633_v40, -inf }
 0x39a   :  { %875 = vmax.xlane.f32.xlu0 %v874_v43  ;;  %878 = vmax.xlane.f32.xlu1 %v877_v44 }
 0x39c   :  { %v709_v45 = vpop.f32.mrb[6].mxu0  ;;  %v785_v46 = vpop.f32.mrb[8].mxu1 }
 0x39d   :  { %v4618_v47 = vpop.f32.mrb[7].mxu0  ;;  %v4623_v48 = vpop.f32.mrb[9].mxu1  ;;  %v880_v49 = vsel %vm258_vm3, %v709_v45, -inf  ;;  %v883_v50 = vsel %vm258_vm3, %v785_v46, -inf }
 0x39e   :  { %881 = vmax.xlane.f32.xlu0 %v880_v49  ;;  %884 = vmax.xlane.f32.xlu1 %v883_v50 }
 0x3a0   :  { %v861_v51 = vpop.f32.mrb[8].mxu0 }
 0x3a1   :  { %v4628_v52 = vpop.f32.mrb[9].mxu0  ;;  %v886_v53 = vsel %vm258_vm3, %v861_v51, -inf }
 0x3a2   :  { %887 = vmax.xlane.f32.xlu0 %v886_v53 }
 0x3af   :  { %953 = vrot.lane.b32.xlu1 %v5189_v15, %s5102_s28 }
 0x3b3   :  { %1105 = vrot.lane.b32.xlu1 %v5213_v17, %s5102_s28 }
 0x3b7   :  { %1181 = vrot.lane.b32.xlu1 %v5219_v19, %s5102_s28 }
 0x3b8   :  { %1029 = vrot.lane.b32.xlu0 %v5187_v14, %s5102_s28 }
 0x3bb   :  { %1333 = vrot.lane.b32.xlu1 %v5217_v18, %s5102_s28 }
 0x3bc   :  { %1257 = vrot.lane.b32.xlu0 %v5211_v16, %s5102_s28  ;;  %v867_v56 = vpop.xlane.xlu0 %866 }
 0x3bd   :  { %v889_v57 = vsub.f32 %v329_v30, %v867_v56 }
 0x3bf   :  { %v897_v59 = vmul.f32 1.442695, %v889_v57 }
 0x3c0   :  { %v870_v54 = vpop.xlane.xlu1 %869 }
 0x3c1   :  { %v890_v55 = vsub.f32 %v405_v33, %v870_v54 }
 0x3c3   :  { %v899_v58 = vmul.f32 1.442695, %v890_v55 }
 0x3c5   :  { %4940 = vpow2.f32 %v899_v58 }
 0x3c6   :  { %4942 = vpow2.f32 %v897_v59  ;;  %v144_v59 = vld [vmem:[%s5776_s3] sm:$0xff] }
 0x3cf   :  { %v5303_v60 = vpop.eup %4940 }
 0x3d0   :  { %v916_v61 = vsel %vm258_vm3, %v5303_v60, 0.0  ;;  %v5307_v62 = vpop.eup %4942 }
 0x3d1   :  { %v913_v63 = vsel %vm258_vm3, %v5307_v62, 0.0 }
 0x3db   :  { %917 = vadd.xlane.f32.xlu0 %v916_v61 }
 0x3df   :  { %914 = vadd.xlane.f32.xlu1 %v913_v63 }
 0x423   :  { %v873_v0 = vpop.xlane.xlu0 %872 }
 0x424   :  { %v891_v1 = vsub.f32 %v481_v36, %v873_v0 }
 0x426   :  { %v901_v2 = vmul.f32 1.442695, %v891_v1 }
 0x427   :  { %v879_v3 = vpop.xlane.xlu1 %878  ;;  %v876_v4 = vpop.xlane.xlu0 %875 }
 0x428   :  { %4944 = vpow2.f32 %v901_v2  ;;  %v893_v5 = vsub.f32 %v633_v40, %v879_v3  ;;  %v892_v6 = vsub.f32 %v557_v39, %v876_v4  ;;  %v145_v2 = vld [vmem:[%s5776_s3 + $0x8] sm:$0xff]  ;;  %v146_v3 = vld [vmem:[%s5776_s3 + $0x10] sm:$0xff]  ;;  %v147_v4 = vld [vmem:[%s5776_s3 + $0x18] sm:$0xff] }
 0x42a   :  { %v905_v7 = vmul.f32 1.442695, %v893_v5  ;;  %v903_v8 = vmul.f32 1.442695, %v892_v6 }
 0x42b   :  { %v885_v9 = vpop.xlane.xlu1 %884  ;;  %v882_v10 = vpop.xlane.xlu0 %881 }
 0x42c   :  { %4946 = vpow2.f32 %v905_v7  ;;  %v895_v14 = vsub.f32 %v785_v46, %v885_v9  ;;  %v894_v15 = vsub.f32 %v709_v45, %v882_v10 }
 0x42d   :  { %4948 = vpow2.f32 %v903_v8 }
 0x42e   :  { %v909_v16 = vmul.f32 1.442695, %v895_v14  ;;  %v907_v17 = vmul.f32 1.442695, %v894_v15 }
 0x42f   :  { %v954_v18 = vpop.permute.xlu1 %953  ;;  %v888_v19 = vpop.xlane.xlu0 %887 }
 0x430   :  { %4950 = vpow2.f32 %v909_v16  ;;  %v896_v22 = vsub.f32 %v861_v51, %v888_v19  ;;  %4630 = vmatpush3.msra.mxu1 %v954_v18 }
 0x431   :  { %4952 = vpow2.f32 %v907_v17  ;;  %4639 = vmatprep.subr.mxu1 %v5096_v13 }
 0x432   :  { %v4945_v23 = vpop.eup %4944  ;;  %v911_v24 = vmul.f32 1.442695, %v896_v22 }
 0x433   :  { %v1030_v25 = vpop.permute.xlu0 %1029  ;;  %v919_v26 = vsel %vm258_vm3, %v4945_v23, 0.0  ;;  %v1106_v37 = vpop.permute.xlu1 %1105 }
 0x434   :  { %4954 = vpow2.f32 %v911_v24  ;;  %920 = vadd.xlane.f32.xlu1 %v919_v26  ;;  %4635 = vmatpush3.msra.mxu0 %v1030_v25 }
 0x435   :  { %4644 = vmatprep.subr.mxu0 %v5096_v13 }
 0x436   :  { %v4947_v27 = vpop.eup %4946 }
 0x437   :  { %v4949_v28 = vpop.eup %4948  ;;  %v925_v29 = vsel %vm258_vm3, %v4947_v27, 0.0  ;;  %v1182_v38 = vpop.permute.xlu1 %1181 }
 0x438   :  { %926 = vadd.xlane.f32.xlu1 %v925_v29  ;;  %v922_v30 = vsel %vm258_vm3, %v4949_v28, 0.0  ;;  %v1258_v39 = vpop.permute.xlu0 %1257  ;;  %v149_v29 = vld [vmem:[%s5777_s4 + $0x8] sm:$0xff] }
 0x439   :  { %923 = vadd.xlane.f32.xlu0 %v922_v30  ;;  %v150_v30 = vld [vmem:[%s5777_s4 + $0x10] sm:$0xff] }
 0x43a   :  { %v4951_v31 = vpop.eup %4950 }
 0x43b   :  { %v4953_v32 = vpop.eup %4952  ;;  %v931_v33 = vsel %vm258_vm3, %v4951_v31, 0.0  ;;  %v1334_v40 = vpop.permute.xlu1 %1333 }
 0x43c   :  { %932 = vadd.xlane.f32.xlu1 %v931_v33  ;;  %v928_v34 = vsel %vm258_vm3, %v4953_v32, 0.0 }
 0x43d   :  { %929 = vadd.xlane.f32.xlu0 %v928_v34  ;;  %v152_v34 = vld [vmem:[%s5778_s5] sm:$0xff] }
 0x43e   :  { %v5318_v35 = vpop.eup %4954 }
 0x43f   :  { %v934_v36 = vsel %vm258_vm3, %v5318_v35, 0.0 }
 0x441   :  { %935 = vadd.xlane.f32.xlu0 %v934_v36  ;;  %v154_v36 = vld [vmem:[%s5778_s5 + $0x10] sm:$0xff] }
 0x44d   :  { %1485 = vrot.lane.b32.xlu1 %v5231_v21, %s5102_s28 }
 0x457   :  { %1409 = vrot.lane.b32.xlu0 %v5225_v20, %s5102_s28 }
 0x468   :  { %v918_v41 = vpop.xlane.xlu0 %917 }
 0x469   :  { %4956 = vrcp.f32 %v918_v41  ;;  %v157_v41 = vld [vmem:[%s5778_s5 + $0x28] sm:$0xff] }
 0x46c   :  { %v915_v42 = vpop.xlane.xlu1 %914 }
 0x46d   :  { %4958 = vrcp.f32 %v915_v42 }
 0x473   :  { %v4957_v43 = vpop.eup %4956 }
 0x474   :  { %v940_v44 = vmul.f32 %v4957_v43, %v5303_v60  ;;  %v1899_v43 = vlaneseq }
 0x476   :  { %4637 = vmatmul.mubr.msk.f32.vlgmr.msra.gmra.mrb[10].mxu0 %vm258_vm3, %v940_v44 }
 0x477   :  { %v4959_v45 = vpop.eup %4958  ;;  %4645 = vmatpush3.msra.mxu0 %v1182_v38  ;;  %4646 = vmatprep.mubr.msk.f32.mxu0 %vm5099_vm2, %v5096_v13  ;;  %v155_v38 = vld [vmem:[%s5778_s5 + $0x18] sm:$0xff] }
 0x478   :  { %v938_v20 = vmul.f32 %v4959_v45, %v5307_v62  ;;  %4654 = vmatprep.subr.mxu0 %v5096_v13  ;;  %v5403_v45 = vshrl.u32 %v1899_v43, 7 }
 0x47a   :  { %4632 = vmatmul.mubr.msk.f32.vlgmr.msra.gmra.mrb[10].mxu1 %vm258_vm3, %v938_v20 }
 0x47b   :  { %4640 = vmatpush3.msra.mxu1 %v1106_v37  ;;  %4641 = vmatprep.mubr.msk.f32.mxu1 %vm5099_vm2, %v5096_v13 }
 0x47c   :  { %4649 = vmatprep.subr.mxu1 %v5096_v13 }
 0x4c1   :  { %v921_v21 = vpop.xlane.xlu1 %920 }
 0x4c2   :  { %4960 = vrcp.f32 %v921_v21 }
 0x4c5   :  { %v927_v46 = vpop.xlane.xlu1 %926 }
 0x4c6   :  { %4962 = vrcp.f32 %v927_v46  ;;  %v924_v47 = vpop.xlane.xlu0 %923 }
 0x4c7   :  { %4964 = vrcp.f32 %v924_v47 }
 0x4c9   :  { %v933_v48 = vpop.xlane.xlu1 %932 }
 0x4ca   :  { %4966 = vrcp.f32 %v933_v48  ;;  %v930_v49 = vpop.xlane.xlu0 %929 }
 0x4cb   :  { %4968 = vrcp.f32 %v930_v49 }
 0x4cc   :  { %v4961_v50 = vpop.eup %4960 }
 0x4cd   :  { %v942_v51 = vmul.f32 %v4961_v50, %v4945_v23  ;;  %v1486_v63 = vpop.permute.xlu1 %1485 }
 0x4ce   :  { %v936_v52 = vpop.xlane.xlu0 %935 }
 0x4cf   :  { %4970 = vrcp.f32 %v936_v52  ;;  %4642 = vmatmul.mubr.msk.f32.vlgmr.msra.gmra.mrb[12].mxu1 %vm258_vm3, %v942_v51  ;;  %v1901_v52 = vsub.s32 0, %v5403_v45 }
 0x4d0   :  { %v4963_v53 = vpop.eup %4962  ;;  %4650 = vmatpush3.msra.mxu1 %v1258_v39  ;;  %4651 = vmatprep.mubr.msk.f32.mxu1 %vm5099_vm2, %v5096_v13  ;;  %v4884_v39 = vpack.c.bf16 %v155_v38, %v154_v36 }
 0x4d1   :  { %v4965_v54 = vpop.eup %4964  ;;  %v946_v55 = vmul.f32 %v4963_v53, %v4947_v27  ;;  %4659 = vmatprep.subr.mxu1 %v5096_v13 }
 0x4d2   :  { %v944_v56 = vmul.f32 %v4965_v54, %v4949_v28  ;;  %v1410_v57 = vpop.permute.xlu0 %1409  ;;  %v148_v28 = vld [vmem:[%s5777_s4] sm:$0xff] }
 0x4d3   :  { %4652 = vmatmul.mubr.msk.f32.vlgmr.msra.gmra.mrb[14].mxu1 %vm258_vm3, %v946_v55  ;;  %v5411_v55 = vld [vmem:[#allocation2 + $0x10] sm:$0xff] }
 0x4d4   :  { %v4967_v58 = vpop.eup %4966  ;;  %4647 = vmatmul.mubr.msk.f32.vlgmr.msra.gmra.mrb[12].mxu0 %vm258_vm3, %v944_v56  ;;  %4660 = vmatpush3.msra.mxu1 %v1410_v57 }
 0x4d5   :  { %v4969_v60 = vpop.eup %4968  ;;  %v950_v61 = vmul.f32 %v4967_v58, %v4951_v31  ;;  %4655 = vmatpush3.msra.mxu0 %v1334_v40  ;;  %4656 = vmatprep.mubr.msk.f32.mxu0 %vm5099_vm2, %v5096_v13  ;;  %v4872_v31 = vpack.c.bf16 %v149_v29, %v148_v28  ;;  %v156_v40 = vld [vmem:[%s5778_s5 + $0x20] sm:$0xff] }
 0x4d6   :  { %v948_v62 = vmul.f32 %v4969_v60, %v4953_v32  ;;  %4661 = vmatprep.mubr.msk.f32.mxu1 %vm5099_vm2, %v5096_v13  ;;  %4664 = vmatprep.subr.mxu0 %v5096_v13  ;;  %v151_v32 = vld [vmem:[%s5777_s4 + $0x18] sm:$0xff]  ;;  %v4888_v42 = vpack.c.bf16 %v157_v41, %v156_v40  ;;  %v1902_v60 = vrot.slane %v5411_v55, %v1901_v52 }
 0x4d7   :  { %4662 = vmatmul.mubr.msk.f32.vlgmr.msra.gmra.mrb[16].mxu1 %vm258_vm3, %v950_v61  ;;  %4669 = vmatprep.subr.mxu1 %v144_v59  ;;  %v4876_v33 = vpack.c.bf16 %v151_v32, %v150_v30 }
 0x4d8   :  { %4657 = vmatmul.mubr.msk.f32.vlgmr.msra.gmra.mrb[14].mxu0 %vm258_vm3, %v948_v62  ;;  %4670 = vmatpush3.msra.mxu1 %v144_v59 }
 0x4d9   :  { %v4971_v0 = vpop.eup %4970  ;;  %4665 = vmatpush3.msra.mxu0 %v1486_v63  ;;  %4666 = vmatprep.mubr.msk.f32.mxu0 %vm5099_vm2, %v5096_v13 }
 0x4da   :  { %v952_v1 = vmul.f32 %v4971_v0, %v5318_v35  ;;  %4674 = vmatprep.subr.mxu0 %v145_v2  ;;  %4679 = vmatprep.subr.mxu1 %v146_v3  ;;  %v153_v35 = vld [vmem:[%s5778_s5 + $0x8] sm:$0xff] }
 0x4db   :  { %v4880_v37 = vpack.c.bf16 %v153_v35, %v152_v34 }
 0x4dc   :  { %4667 = vmatmul.mubr.msk.f32.vlgmr.msra.gmra.mrb[16].mxu0 %vm258_vm3, %v952_v1 }
 0x4dd   :  { %4675 = vmatpush3.msra.mxu0 %v145_v2 }
 0x4de   :  { %4684 = vmatprep.subr.mxu0 %v147_v4 }
 0x549   :  { %v1101_v5 = vpop.f32.mrb[10].mxu0 }
 0x54a   :  { %v4638_v6 = vpop.f32.mrb[11].mxu0 }
 0x54d   :  { %v1025_v7 = vpop.f32.mrb[10].mxu1 }
 0x54e   :  { %v4633_v8 = vpop.f32.mrb[11].mxu1  ;;  %4671 = vmatprep.mubr.msk.f32.mxu1 %vm258_vm3, %v1025_v7 }
 0x54f   :  { %4672 = vmatmul.mubr.msk.f32.vlgmr.msra.gmra.mrb[18].mxu1 %vm258_vm3, %v1101_v5 }
 0x550   :  { %4680 = vmatpush3.msra.mxu1 %v146_v3 }
 0x551   :  { %4873 = vmatprep.subr.bf16.mxu1 %v4872_v31 }
 0x5a2   :  { %v1177_v9 = vpop.f32.mrb[12].mxu1 }
 0x5a3   :  { %v4643_v10 = vpop.f32.mrb[13].mxu1  ;;  %4676 = vmatprep.mubr.msk.f32.mxu0 %vm258_vm3, %v1177_v9 }
 0x5a6   :  { %v1329_v14 = vpop.f32.mrb[14].mxu1 }
 0x5a7   :  { %v1253_v15 = vpop.f32.mrb[12].mxu0  ;;  %v4653_v16 = vpop.f32.mrb[15].mxu1  ;;  %4681 = vmatprep.mubr.msk.f32.mxu1 %vm258_vm3, %v1329_v14 }
 0x5a8   :  { %v4648_v17 = vpop.f32.mrb[13].mxu0  ;;  %4677 = vmatmul.mubr.msk.f32.vlgmr.msra.gmra.mrb[18].mxu0 %vm258_vm3, %v1253_v15 }
 0x5a9   :  { %4685 = vmatpush3.msra.mxu0 %v147_v4 }
 0x5aa   :  { %v1481_v18 = vpop.f32.mrb[16].mxu1  ;;  %4881 = vmatprep.subr.bf16.mxu0 %v4880_v37 }
 0x5ab   :  { %v1405_v19 = vpop.f32.mrb[14].mxu0  ;;  %v4663_v22 = vpop.f32.mrb[17].mxu1  ;;  %4686 = vmatprep.mubr.msk.f32.mxu0 %vm258_vm3, %v1481_v18 }
 0x5ac   :  { %v4658_v23 = vpop.f32.mrb[15].mxu0  ;;  %4682 = vmatmul.mubr.msk.f32.vlgmr.msra.gmra.mrb[20].mxu1 %vm258_vm3, %v1405_v19 }
 0x5ad   :  { %4875 = vmatpush3.bf16.msra.mxu1 %v4872_v31 }
 0x5ae   :  { %4877 = vmatprep.subr.bf16.mxu1 %v4876_v33 }
 0x5af   :  { %v1557_v24 = vpop.f32.mrb[16].mxu0 }
 0x5b0   :  { %v4668_v25 = vpop.f32.mrb[17].mxu0  ;;  %4687 = vmatmul.mubr.msk.f32.vlgmr.msra.gmra.mrb[20].mxu0 %vm258_vm3, %v1557_v24 }
 0x5b1   :  { %4879 = vmatpush3.bf16.msra.mxu1 %v4876_v33  ;;  %4883 = vmatpush3.bf16.msra.mxu0 %v4880_v37 }
 0x5b2   :  { %4885 = vmatprep.subr.bf16.mxu0 %v4884_v39 }
 0x5b5   :  { %4887 = vmatpush3.bf16.msra.mxu0 %v4884_v39 }
 0x5b6   :  { %4889 = vmatprep.subr.bf16.mxu0 %v4888_v42 }
 0x5b9   :  { %4891 = vmatpush3.bf16.msra.mxu0 %v4888_v42 }
 0x622   :  { %v4673_v26 = vpop.f32.mrb[18].mxu1 }
 0x623   :  { %v1633_v27 = vpop.f32.mrb[19].mxu1  ;;  %v1892_v20 = vsel %vm160_vm1, %v4673_v26, 0.0 }
 0x624   :  { %v1885_v47 = vsel %vm160_vm1, %v1633_v27, 0.0 }
 0x67b   :  { %v4678_v44 = vpop.f32.mrb[18].mxu0 }
 0x67c   :  { %v1893_v21 = vsel %vm160_vm1, %v4678_v44, 0.0  ;;  %v1714_v46 = vpop.f32.mrb[19].mxu0 }
 0x67d   :  { %v1894_v48 = vadd.f32 %v1893_v21, %v1892_v20  ;;  %v1886_v49 = vsel %vm160_vm1, %v1714_v46, 0.0 }
 0x67e   :  { %v1887_v50 = vadd.f32 %v1886_v49, %v1885_v47 }
 0x67f   :  { %v4683_v51 = vpop.f32.mrb[20].mxu1 }
 0x680   :  { %v1895_v53 = vsel %vm160_vm1, %v4683_v51, 0.0  ;;  %v1795_v54 = vpop.f32.mrb[21].mxu1  ;;  %v5427_v51 = vsub.s32 1, %v5403_v45 }
 0x681   :  { %v1896_v56 = vadd.f32 %v1895_v53, %v1894_v48  ;;  %v1888_v57 = vsel %vm160_vm1, %v1795_v54, 0.0 }
 0x682   :  { %v1889_v58 = vadd.f32 %v1888_v57, %v1887_v50 }
 0x683   :  { %v4688_v59 = vpop.f32.mrb[20].mxu0 }
 0x684   :  { %v1897_v61 = vsel %vm160_vm1, %v4688_v59, 0.0  ;;  %v1876_v62 = vpop.f32.mrb[21].mxu0 }
 0x685   :  { %v1898_v63 = vadd.f32 %v1897_v61, %v1896_v56  ;;  %v1890_v0 = vsel %vm160_vm1, %v1876_v62, 0.0 }
 0x686   :  { %v1891_v1 = vadd.f32 %v1890_v0, %v1889_v58  ;;  %v5431_v58 = vsub.s32 2, %v5403_v45 }
 0x687   :  { %v1904_v2 = vadd.f32 %v1902_v60, %v1898_v63 }
 0x688   :  { %v1903_v3 = vadd.f32 %v1902_v60, %v1891_v1 }
 0x689   :  { %v1906_v4 = vadd.f32 %v5177_v11, %v1904_v2 }
 0x68a   :  { %v1905_v5 = vadd.f32 %v1903_v3, %v5179_v12 }
 0x68b   :  { %v1914_v6 = vsel %vm160_vm1, %v1906_v4, 0.0  ;;  %v1922_v7 = vmul.f32 %v1906_v4, %v1906_v4 }
 0x68c   :  { %v1915_v8 = vrot.slane %v1914_v6, 4  ;;  %v1907_v9 = vsel %vm160_vm1, %v1905_v5, 0.0  ;;  %v1921_v10 = vmul.f32 %v1905_v5, %v1905_v5 }
 0x68d   :  { %v1930_v14 = vsel %vm160_vm1, %v1922_v7, 0.0  ;;  %v1908_v15 = vrot.slane %v1907_v9, 4 }
 0x68e   :  { %v1916_v16 = vadd.f32 %v1915_v8, %v1914_v6  ;;  %v1931_v17 = vrot.slane %v1930_v14, 4  ;;  %v1923_v18 = vsel %vm160_vm1, %v1921_v10, 0.0  ;;  %v158_v8 = vld [vmem:[%s5778_s5 + $0x30] sm:$0xff] }
 0x68f   :  { %v1909_v19 = vadd.f32 %v1908_v15, %v1907_v9  ;;  %v1924_v22 = vrot.slane %v1923_v18, 4  ;;  %v159_v9 = vld [vmem:[%s5778_s5 + $0x38] sm:$0xff] }
 0x690   :  { %v1917_v23 = vrot.slane %v1916_v16, 2  ;;  %v1932_v11 = vadd.f32 %v1931_v17, %v1930_v14  ;;  %v4892_v10 = vpack.c.bf16 %v159_v9, %v158_v8 }
 0x691   :  { %v1910_v24 = vrot.slane %v1909_v19, 2  ;;  %v1925_v12 = vadd.f32 %v1924_v22, %v1923_v18  ;;  %v2231_v22 = vld [vmem:[#allocation5 + $0x20] sm:$0xff] }
 0x692   :  { %v1918_v25 = vadd.f32 %v1917_v23, %v1916_v16  ;;  %v1933_v26 = vrot.slane %v1932_v11, 2  ;;  %4893 = vmatprep.subr.bf16.mxu0 %v4892_v10  ;;  %v2232_v23 = vld [vmem:[#allocation5 + $0x28] sm:$0xff] }
 0x693   :  { %v1911_v27 = vadd.f32 %v1910_v24, %v1909_v19  ;;  %v1926_v28 = vrot.slane %v1925_v12, 2  ;;  %4895 = vmatpush3.bf16.msra.mxu0 %v4892_v10  ;;  %v2233_v24 = vld [vmem:[#allocation5 + $0x30] sm:$0xff] }
 0x694   :  { %v1919_v29 = vrot.slane %v1918_v25, 1  ;;  %v1934_v30 = vadd.f32 %v1933_v26, %v1932_v11  ;;  %4735 = vmatprep.subr.mxu0 %v5096_v13  ;;  %v4896_v11 = vpack.c.bf16 %v2232_v23, %v2231_v22  ;;  %v2070_v26 = vsub.s32 3, %v5403_v45 }
 0x695   :  { %v1912_v31 = vrot.slane %v1911_v27, 1  ;;  %v1927_v32 = vadd.f32 %v1926_v28, %v1925_v12  ;;  %v2234_v12 = vld [vmem:[#allocation5 + $0x38] sm:$0xff]  ;;  %v5467_v22 = vsub.s32 4, %v5403_v45 }
 0x696   :  { %v1920_v33 = vadd.f32 %v1919_v29, %v1918_v25  ;;  %v1935_v34 = vrot.slane %v1934_v30, 1  ;;  %4897 = vmatprep.subr.bf16.mxu1 %v4896_v11  ;;  %v4900_v25 = vpack.c.bf16 %v2234_v12, %v2233_v24 }
 0x697   :  { %v1913_v35 = vadd.f32 %v1912_v31, %v1911_v27  ;;  %v1928_v36 = vrot.slane %v1927_v32, 1  ;;  %v2071_v27 = vrot.slane %v5411_v55, %v2070_v26 }
 0x698   :  { %v1936_v37 = vadd.f32 %v1935_v34, %v1934_v30  ;;  %v1938_v38 = vmul.f32 0.125, %v1920_v33 }
 0x699   :  { %v1929_v39 = vadd.f32 %v1928_v36, %v1927_v32  ;;  %v1937_v40 = vmul.f32 0.125, %v1913_v35 }
 0x69a   :  { %v1940_v41 = vmul.f32 0.125, %v1936_v37  ;;  %v1942_v42 = vmul.f32 %v1938_v38, %v1938_v38 }
 0x69b   :  { %v1939_v43 = vmul.f32 0.125, %v1929_v39  ;;  %v1941_v44 = vmul.f32 %v1937_v40, %v1937_v40 }
 0x69c   :  { %v1944_v20 = vsub.f32 %v1940_v41, %v1942_v42 }
 0x69d   :  { %v1943_v21 = vsub.f32 %v1939_v43, %v1941_v44 }
 0x69e   :  { %v1946_v46 = vadd.f32 1e-05, %v1944_v20 }
 0x69f   :  { %v1945_v47 = vadd.f32 1e-05, %v1943_v21 }
 0x6a0   :  { %4972 = vrsqrt.f32 %v1946_v46 }
 0x6a1   :  { %4974 = vrsqrt.f32 %v1945_v47 }
 0x6aa   :  { %v4973_v48 = vpop.eup %4972 }
 0x6ab   :  { %v4975_v49 = vpop.eup %4974  ;;  %v1950_v50 = vmul.f32 %v4973_v48, %v5411_v55 }
 0x6ac   :  { %v1949_v53 = vmul.f32 %v4975_v49, %v5411_v55 }
 0x6ad   :  { %v1952_v54 = vmul.f32 %v1950_v50, %v1938_v38  ;;  %v1968_v61 = vrot.slane %v1950_v50, %v5427_v51 }
 0x6ae   :  { %v1951_v56 = vmul.f32 %v1949_v53, %v1937_v40  ;;  %v1964_v60 = vrot.slane %v1949_v53, %v5427_v51 }
 0x6af   :  { %v1956_v57 = vrot.slane %v1952_v54, 7  ;;  %v1970_v3 = vmul.f32 %v1968_v61, %v1906_v4  ;;  %v1983_v4 = vsub.s32 6, %v5403_v45 }
 0x6b0   :  { %v1955_v59 = vrot.slane %v1951_v56, 7  ;;  %v1969_v1 = vmul.f32 %v1964_v60, %v1905_v5 }
 0x6b1   :  { %v1960_v62 = vsub.f32 %v5411_v55, %v1956_v57  ;;  %v1984_v5 = vrot.slane %v5411_v55, %v1983_v4 }
 0x6b2   :  { %v1959_v63 = vsub.f32 %v5411_v55, %v1955_v59 }
 0x6b3   :  { %v1978_v0 = vrot.slane %v1960_v62, %v5431_v58 }
 0x6b4   :  { %v1974_v2 = vrot.slane %v1959_v63, %v5431_v58 }
 0x6b5   :  { %v1980_v7 = vadd.f32 %v1978_v0, %v1970_v3 }
 0x6b6   :  { %v1979_v6 = vadd.f32 %v1974_v2, %v1969_v1 }
 0x6b8   :  { %4697 = vmatprep.mubr.msk.f32.mxu1 %vm160_vm1, %v1979_v6 }
 0x6b9   :  { %4698 = vmatmul.mubr.msk.f32.vlgmr.msra.gmra.mrb[22].mxu1 %vm160_vm1, %v1980_v7 }
 0x6ba   :  { %4899 = vmatpush3.bf16.msra.mxu1 %v4896_v11 }
 0x6bb   :  { %4901 = vmatprep.subr.bf16.mxu1 %v4900_v25 }
 0x6be   :  { %4903 = vmatpush3.bf16.msra.mxu1 %v4900_v25  ;;  %v5471_v25 = vsub.s32 5, %v5403_v45 }
 0x6bf   :  { %4730 = vmatprep.subr.mxu1 %v5096_v13 }
 0x78c   :  { %v4699_v14 = vpop.f32.mrb[22].mxu1 }
 0x78d   :  { %v2063_v15 = vadd.f32 %v4699_v14, %v1984_v5  ;;  %v2057_v16 = vpop.f32.mrb[23].mxu1 }
 0x78e   :  { %v2058_v17 = vadd.f32 %v2057_v16, %v1984_v5 }
 0x78f   :  { %v2067_v19 = vmax.f32 %v2063_v15, 0.0 }
 0x790   :  { %v2066_v18 = vmax.f32 %v2058_v17, 0.0 }
 0x792   :  { %4716 = vmatprep.mubr.msk.f32.mxu0 %vm2072_vm4, %v2066_v18 }
 0x793   :  { %4717 = vmatmul.mubr.msk.f32.vlgmr.msra.gmra.mrb[22].mxu0 %vm2072_vm4, %v2067_v19 }
 0x794   :  { %4737 = vmatprep.mubr.msk.f32.mxu0 %vm5099_vm2, %v5096_v13 }
 0x866   :  { %v4718_v28 = vpop.f32.mrb[22].mxu0 }
 0x867   :  { %v2151_v29 = vadd.f32 %v4718_v28, %v2071_v27  ;;  %v2145_v30 = vpop.f32.mrb[23].mxu0 }
 0x868   :  { %v2146_v31 = vadd.f32 %v2145_v30, %v2071_v27 }
 0x869   :  { %v2155_v32 = vadd.f32 %v2151_v29, %v1980_v7 }
 0x86a   :  { %v2154_v33 = vadd.f32 %v2146_v31, %v1979_v6 }
 0x86b   :  { %v2163_v34 = vsel %vm160_vm1, %v2155_v32, 0.0  ;;  %v2171_v35 = vmul.f32 %v2155_v32, %v2155_v32 }
 0x86c   :  { %v2164_v36 = vrot.slane %v2163_v34, 4  ;;  %v2156_v37 = vsel %vm160_vm1, %v2154_v33, 0.0  ;;  %v2170_v38 = vmul.f32 %v2154_v33, %v2154_v33 }
 0x86d   :  { %v2179_v39 = vsel %vm160_vm1, %v2171_v35, 0.0  ;;  %v2157_v40 = vrot.slane %v2156_v37, 4 }
 0x86e   :  { %v2165_v41 = vadd.f32 %v2164_v36, %v2163_v34  ;;  %v2180_v42 = vrot.slane %v2179_v39, 4  ;;  %v2172_v43 = vsel %vm160_vm1, %v2170_v38, 0.0 }
 0x86f   :  { %v2158_v44 = vadd.f32 %v2157_v40, %v2156_v37  ;;  %v2173_v20 = vrot.slane %v2172_v43, 4 }
 0x870   :  { %v2166_v21 = vrot.slane %v2165_v41, 2  ;;  %v2181_v46 = vadd.f32 %v2180_v42, %v2179_v39 }
 0x871   :  { %v2159_v47 = vrot.slane %v2158_v44, 2  ;;  %v2174_v48 = vadd.f32 %v2173_v20, %v2172_v43 }
 0x872   :  { %v2167_v49 = vadd.f32 %v2166_v21, %v2165_v41  ;;  %v2182_v50 = vrot.slane %v2181_v46, 2 }
 0x873   :  { %v2160_v53 = vadd.f32 %v2159_v47, %v2158_v44  ;;  %v2175_v54 = vrot.slane %v2174_v48, 2 }
 0x874   :  { %v2168_v56 = vrot.slane %v2167_v49, 1  ;;  %v2183_v57 = vadd.f32 %v2182_v50, %v2181_v46 }
 0x875   :  { %v2161_v59 = vrot.slane %v2160_v53, 1  ;;  %v2176_v60 = vadd.f32 %v2175_v54, %v2174_v48 }
 0x876   :  { %v2169_v61 = vadd.f32 %v2168_v56, %v2167_v49  ;;  %v2184_v62 = vrot.slane %v2183_v57, 1 }
 0x877   :  { %v2162_v63 = vadd.f32 %v2161_v59, %v2160_v53  ;;  %v2177_v0 = vrot.slane %v2176_v60, 1 }
 0x878   :  { %v2185_v1 = vadd.f32 %v2184_v62, %v2183_v57  ;;  %v2187_v2 = vmul.f32 0.125, %v2169_v61 }
 0x879   :  { %v2178_v3 = vadd.f32 %v2177_v0, %v2176_v60  ;;  %v2186_v6 = vmul.f32 0.125, %v2162_v63 }
 0x87a   :  { %v2189_v7 = vmul.f32 0.125, %v2185_v1  ;;  %v2191_v8 = vmul.f32 %v2187_v2, %v2187_v2 }
 0x87b   :  { %v2188_v9 = vmul.f32 0.125, %v2178_v3  ;;  %v2190_v10 = vmul.f32 %v2186_v6, %v2186_v6 }
 0x87c   :  { %v2193_v5 = vsub.f32 %v2189_v7, %v2191_v8 }
 0x87d   :  { %v2192_v14 = vsub.f32 %v2188_v9, %v2190_v10 }
 0x87e   :  { %v2195_v15 = vadd.f32 1e-05, %v2193_v5 }
 0x87f   :  { %v2194_v16 = vadd.f32 1e-05, %v2192_v14 }
 0x880   :  { %4976 = vrsqrt.f32 %v2195_v15 }
 0x881   :  { %4978 = vrsqrt.f32 %v2194_v16 }
 0x88a   :  { %v4977_v17 = vpop.eup %4976 }
 0x88b   :  { %v4979_v18 = vpop.eup %4978  ;;  %v2199_v19 = vmul.f32 %v4977_v17, %v5411_v55 }
 0x88c   :  { %v2198_v23 = vmul.f32 %v4979_v18, %v5411_v55 }
 0x88d   :  { %v2201_v11 = vmul.f32 %v2199_v19, %v2187_v2  ;;  %v2217_v30 = vrot.slane %v2199_v19, %v5467_v22 }
 0x88e   :  { %v2200_v24 = vmul.f32 %v2198_v23, %v2186_v6  ;;  %v2213_v27 = vrot.slane %v2198_v23, %v5467_v22 }
 0x88f   :  { %v2205_v12 = vrot.slane %v2201_v11, 7  ;;  %v2219_v37 = vmul.f32 %v2217_v30, %v2155_v32 }
 0x890   :  { %v2204_v28 = vrot.slane %v2200_v24, 7  ;;  %v2218_v35 = vmul.f32 %v2213_v27, %v2154_v33 }
 0x891   :  { %v2209_v29 = vsub.f32 %v5411_v55, %v2205_v12 }
 0x892   :  { %v2208_v31 = vsub.f32 %v5411_v55, %v2204_v28 }
 0x893   :  { %v2227_v34 = vrot.slane %v2209_v29, %v5471_v25 }
 0x894   :  { %v2223_v36 = vrot.slane %v2208_v31, %v5471_v25 }
 0x895   :  { %v5481_v39 = vadd.f32 %v2227_v34, %v2219_v37 }
 0x896   :  { %v5479_v38 = vadd.f32 %v2223_v36, %v2218_v35 }
 0x898   :  { %4727 = vmatprep.mubr.msk.f32.mxu1 %vm160_vm1, %v5479_v38 }
 0x899   :  { %4728 = vmatmul.mubr.msk.f32.vlgmr.msra.gmra.mrb[24].mxu1 %vm160_vm1, %v5481_v39 }
 0x89a   :  { %4732 = vmatprep.mubr.msk.f32.mxu1 %vm5099_vm2, %v5096_v13 }
 0x96c   :  { %v5489_v55 = vpop.f32.mrb[24].mxu1 }
 0x96d   :  { %2339 = vrot.lane.b32.xlu1 %v5489_v55, %s5098_s25  ;;  %v5493_v33 = vpop.f32.mrb[25].mxu1 }
 0x96e   :  { %2337 = vrot.lane.b32.xlu0 %v5493_v33, %s5098_s25 }
 0x971   :  { %2343 = vrot.lane.b32.xlu1 %v5489_v55, %s5097_s0 }
 0x972   :  { %2341 = vrot.lane.b32.xlu0 %v5493_v33, %s5097_s0 }
 0x975   :  { %2347 = vrot.lane.b32.xlu1 %v5489_v55, %s5100_s26 }
 0x976   :  { %2345 = vrot.lane.b32.xlu0 %v5493_v33, %s5100_s26 }
 0x979   :  { %2425 = vrot.lane.b32.xlu1 %v5489_v55, %s5101_s27 }
 0x97a   :  { %2349 = vrot.lane.b32.xlu0 %v5493_v33, %s5101_s27 }
 0x9df   :  { %v5509_v32 = vpop.permute.xlu1 %2339 }
 0x9e0   :  { %2577 = vrot.lane.b32.xlu1 %v5509_v32, %s5101_s27  ;;  %v5513_v40 = vpop.permute.xlu0 %2337 }
 0x9e1   :  { %2501 = vrot.lane.b32.xlu0 %v5513_v40, %s5101_s27 }
 0x9e3   :  { %v5517_v41 = vpop.permute.xlu1 %2343 }
 0x9e4   :  { %2729 = vrot.lane.b32.xlu1 %v5517_v41, %s5101_s27  ;;  %v5521_v42 = vpop.permute.xlu0 %2341 }
 0x9e5   :  { %2653 = vrot.lane.b32.xlu0 %v5521_v42, %s5101_s27 }
 0x9e7   :  { %v5525_v43 = vpop.permute.xlu1 %2347 }
 0x9e8   :  { %2881 = vrot.lane.b32.xlu1 %v5525_v43, %s5101_s27  ;;  %v5529_v44 = vpop.permute.xlu0 %2345 }
 0x9e9   :  { %2805 = vrot.lane.b32.xlu0 %v5529_v44, %s5101_s27 }
 0x9eb   :  { %v2426_v20 = vpop.permute.xlu1 %2425 }
 0x9ec   :  { %4736 = vmatpush3.xpose.msk.msra.mxu0 %vm258_vm3, %v2426_v20  ;;  %v2350_v21 = vpop.permute.xlu0 %2349 }
 0x9ed   :  { %4731 = vmatpush3.xpose.msk.msra.mxu1 %vm258_vm3, %v2350_v21  ;;  %4745 = vmatprep.subr.mxu0 %v5096_v13 }
 0x9ee   :  { %4740 = vmatprep.subr.mxu1 %v5096_v13 }
 0x9ef   :  { %4738 = vmatmul.mubr.msk.f32.vlgmr.msra.gmra.mrb[24].mxu0 %vm258_vm3, %v5489_v55 }
 0x9f0   :  { %4733 = vmatmul.mubr.msk.f32.vlgmr.msra.gmra.mrb[26].mxu1 %vm258_vm3, %v5493_v33  ;;  %4747 = vmatprep.mubr.msk.f32.mxu0 %vm5099_vm2, %v5096_v13 }
 0x9f1   :  { %4742 = vmatprep.mubr.msk.f32.mxu1 %vm5099_vm2, %v5096_v13 }
 0xa52   :  { %v2578_v46 = vpop.permute.xlu1 %2577 }
 0xa53   :  { %4746 = vmatpush3.xpose.msk.msra.mxu0 %vm258_vm3, %v2578_v46  ;;  %v2502_v47 = vpop.permute.xlu0 %2501 }
 0xa54   :  { %4741 = vmatpush3.xpose.msk.msra.mxu1 %vm258_vm3, %v2502_v47  ;;  %4755 = vmatprep.subr.mxu0 %v5096_v13 }
 0xa55   :  { %4750 = vmatprep.subr.mxu1 %v5096_v13 }
 0xa56   :  { %4748 = vmatmul.mubr.msk.f32.vlgmr.msra.gmra.mrb[26].mxu0 %vm258_vm3, %v5509_v32  ;;  %v2730_v48 = vpop.permute.xlu1 %2729 }
 0xa57   :  { %4743 = vmatmul.mubr.msk.f32.vlgmr.msra.gmra.mrb[28].mxu1 %vm258_vm3, %v5513_v40  ;;  %4756 = vmatpush3.xpose.msk.msra.mxu0 %vm258_vm3, %v2730_v48  ;;  %v2654_v49 = vpop.permute.xlu0 %2653 }
 0xa58   :  { %4751 = vmatpush3.xpose.msk.msra.mxu1 %vm258_vm3, %v2654_v49  ;;  %4757 = vmatprep.mubr.msk.f32.mxu0 %vm5099_vm2, %v5096_v13 }
 0xa59   :  { %4765 = vmatprep.subr.mxu0 %v5096_v13  ;;  %4752 = vmatprep.mubr.msk.f32.mxu1 %vm5099_vm2, %v5096_v13 }
 0xa5a   :  { %4758 = vmatmul.mubr.msk.f32.vlgmr.msra.gmra.mrb[28].mxu0 %vm258_vm3, %v5517_v41  ;;  %v2882_v50 = vpop.permute.xlu1 %2881  ;;  %4760 = vmatprep.subr.mxu1 %v5096_v13 }
 0xa5b   :  { %4753 = vmatmul.mubr.msk.f32.vlgmr.msra.gmra.mrb[30].mxu1 %vm258_vm3, %v5521_v42  ;;  %4766 = vmatpush3.xpose.msk.msra.mxu0 %vm258_vm3, %v2882_v50  ;;  %v2806_v53 = vpop.permute.xlu0 %2805 }
 0xa5c   :  { %4761 = vmatpush3.xpose.msk.msra.mxu1 %vm258_vm3, %v2806_v53  ;;  %4767 = vmatprep.mubr.msk.f32.mxu0 %vm5099_vm2, %v5096_v13 }
 0xa5d   :  { %4762 = vmatprep.mubr.msk.f32.mxu1 %vm5099_vm2, %v5096_v13  ;;  %4770 = vmatprep.subr.mxu1 %v5096_v13 }
 0xa5e   :  { %4768 = vmatmul.mubr.msk.f32.vlgmr.msra.gmra.mrb[30].mxu0 %vm258_vm3, %v5525_v43  ;;  %4775 = vmatprep.subr.mxu0 %v5096_v13 }
 0xa5f   :  { %4763 = vmatmul.mubr.msk.f32.vlgmr.msra.gmra.mrb[32].mxu1 %vm258_vm3, %v5529_v44  ;;  %4777 = vmatprep.mubr.msk.f32.mxu0 %vm5099_vm2, %v5096_v13 }
 0xa60   :  { %4772 = vmatprep.mubr.msk.f32.mxu1 %vm5099_vm2, %v5096_v13 }
 0xac2   :  { %v2497_v54 = vpop.f32.mrb[24].mxu0 }
 0xac3   :  { %v2421_v56 = vpop.f32.mrb[26].mxu1  ;;  %v4739_v57 = vpop.f32.mrb[25].mxu0  ;;  %v2960_v59 = vsel %vm258_vm3, %v2497_v54, -inf }
 0xac4   :  { %2961 = vmax.xlane.f32.xlu1 %v2960_v59  ;;  %v4734_v60 = vpop.f32.mrb[27].mxu1  ;;  %v2957_v61 = vsel %vm258_vm3, %v2421_v56, -inf }
 0xac5   :  { %2958 = vmax.xlane.f32.xlu0 %v2957_v61 }
 0xb29   :  { %v2649_v62 = vpop.f32.mrb[26].mxu0 }
 0xb2a   :  { %v2573_v63 = vpop.f32.mrb[28].mxu1  ;;  %v4749_v0 = vpop.f32.mrb[27].mxu0  ;;  %v2966_v9 = vsel %vm258_vm3, %v2649_v62, -inf }
 0xb2b   :  { %v4744_v1 = vpop.f32.mrb[29].mxu1  ;;  %v2963_v2 = vsel %vm258_vm3, %v2573_v63, -inf }
 0xb2c   :  { %2964 = vmax.xlane.f32.xlu0 %v2963_v2 }
 0xb2d   :  { %v2801_v3 = vpop.f32.mrb[28].mxu0 }
 0xb2e   :  { %v2725_v6 = vpop.f32.mrb[30].mxu1  ;;  %v4759_v7 = vpop.f32.mrb[29].mxu0  ;;  %v2972_v17 = vsel %vm258_vm3, %v2801_v3, -inf }
 0xb2f   :  { %v4754_v8 = vpop.f32.mrb[31].mxu1  ;;  %v2969_v10 = vsel %vm258_vm3, %v2725_v6, -inf }
 0xb30   :  { %2967 = vmax.xlane.f32.xlu0 %v2966_v9  ;;  %2970 = vmax.xlane.f32.xlu1 %v2969_v10 }
 0xb31   :  { %v2953_v5 = vpop.f32.mrb[30].mxu0 }
 0xb32   :  { %v2877_v14 = vpop.f32.mrb[32].mxu1  ;;  %v4769_v15 = vpop.f32.mrb[31].mxu0  ;;  %v2978_v19 = vsel %vm258_vm3, %v2953_v5, -inf }
 0xb33   :  { %v4764_v16 = vpop.f32.mrb[33].mxu1  ;;  %v2975_v18 = vsel %vm258_vm3, %v2877_v14, -inf }
 0xb34   :  { %2973 = vmax.xlane.f32.xlu0 %v2972_v17  ;;  %2976 = vmax.xlane.f32.xlu1 %v2975_v18 }
 0xb38   :  { %2979 = vmax.xlane.f32.xlu0 %v2978_v19 }
 0xb45   :  { %3045 = vrot.lane.b32.xlu1 %v5493_v33, %s5102_s28 }
 0xb49   :  { %3197 = vrot.lane.b32.xlu1 %v5513_v40, %s5102_s28 }
 0xb4d   :  { %3273 = vrot.lane.b32.xlu1 %v5509_v32, %s5102_s28 }
 0xb4e   :  { %3121 = vrot.lane.b32.xlu0 %v5489_v55, %s5102_s28 }
 0xb51   :  { %3425 = vrot.lane.b32.xlu1 %v5517_v41, %s5102_s28  ;;  %v2962_v23 = vpop.xlane.xlu1 %2961 }
 0xb52   :  { %3349 = vrot.lane.b32.xlu0 %v5521_v42, %s5102_s28  ;;  %v2982_v11 = vsub.f32 %v2497_v54, %v2962_v23  ;;  %v2959_v24 = vpop.xlane.xlu0 %2958 }
 0xb53   :  { %v2981_v27 = vsub.f32 %v2421_v56, %v2959_v24 }
 0xb54   :  { %v2991_v12 = vmul.f32 1.442695, %v2982_v11 }
 0xb55   :  { %v2989_v28 = vmul.f32 1.442695, %v2981_v27 }
 0xb56   :  { %4980 = vpow2.f32 %v2991_v12 }
 0xb57   :  { %4982 = vpow2.f32 %v2989_v28 }
 0xb60   :  { %v5601_v29 = vpop.eup %4980 }
 0xb61   :  { %v3008_v30 = vsel %vm258_vm3, %v5601_v29, 0.0  ;;  %v5605_v31 = vpop.eup %4982 }
 0xb62   :  { %v3005_v34 = vsel %vm258_vm3, %v5605_v31, 0.0 }
 0xb71   :  { %3009 = vadd.xlane.f32.xlu0 %v3008_v30 }
 0xb75   :  { %3006 = vadd.xlane.f32.xlu1 %v3005_v34 }
 0xbb9   :  { %v2965_v35 = vpop.xlane.xlu0 %2964 }
 0xbba   :  { %v2983_v36 = vsub.f32 %v2573_v63, %v2965_v35 }
 0xbbc   :  { %v2993_v37 = vmul.f32 1.442695, %v2983_v36 }
 0xbbd   :  { %v2971_v55 = vpop.xlane.xlu1 %2970  ;;  %v2968_v33 = vpop.xlane.xlu0 %2967 }
 0xbbe   :  { %4984 = vpow2.f32 %v2993_v37  ;;  %v2985_v32 = vsub.f32 %v2725_v6, %v2971_v55  ;;  %v2984_v40 = vsub.f32 %v2649_v62, %v2968_v33  ;;  %v4381_v55 = vld [vmem:[%s5776_s3 + $0x20] sm:$0xff] }
 0xbc0   :  { %v2997_v41 = vmul.f32 1.442695, %v2985_v32  ;;  %v2995_v42 = vmul.f32 1.442695, %v2984_v40 }
 0xbc1   :  { %v2977_v20 = vpop.xlane.xlu1 %2976  ;;  %v2974_v21 = vpop.xlane.xlu0 %2973 }
 0xbc2   :  { %4986 = vpow2.f32 %v2997_v41  ;;  %v2987_v46 = vsub.f32 %v2877_v14, %v2977_v20  ;;  %v2986_v47 = vsub.f32 %v2801_v3, %v2974_v21  ;;  %v4382_v21 = vld [vmem:[%s5776_s3 + $0x28] sm:$0xff] }
 0xbc3   :  { %4988 = vpow2.f32 %v2995_v42 }
 0xbc4   :  { %v3001_v48 = vmul.f32 1.442695, %v2987_v46  ;;  %v2999_v49 = vmul.f32 1.442695, %v2986_v47  ;;  %v4383_v46 = vld [vmem:[%s5776_s3 + $0x30] sm:$0xff]  ;;  %v4384_v47 = vld [vmem:[%s5776_s3 + $0x38] sm:$0xff] }
 0xbc5   :  { %v3046_v50 = vpop.permute.xlu1 %3045  ;;  %v2980_v53 = vpop.xlane.xlu0 %2979 }
 0xbc6   :  { %4990 = vpow2.f32 %v3001_v48  ;;  %v2988_v54 = vsub.f32 %v2953_v5, %v2980_v53  ;;  %4771 = vmatpush3.msra.mxu1 %v3046_v50 }
 0xbc7   :  { %4992 = vpow2.f32 %v2999_v49  ;;  %4780 = vmatprep.subr.mxu1 %v5096_v13 }
 0xbc8   :  { %v4985_v56 = vpop.eup %4984  ;;  %v3003_v57 = vmul.f32 1.442695, %v2988_v54 }
 0xbc9   :  { %v3122_v59 = vpop.permute.xlu0 %3121  ;;  %v3011_v60 = vsel %vm258_vm3, %v4985_v56, 0.0  ;;  %v3198_v9 = vpop.permute.xlu1 %3197 }
 0xbca   :  { %4994 = vpow2.f32 %v3003_v57  ;;  %3012 = vadd.xlane.f32.xlu1 %v3011_v60  ;;  %4776 = vmatpush3.msra.mxu0 %v3122_v59 }
 0xbcb   :  { %4785 = vmatprep.subr.mxu0 %v5096_v13 }
 0xbcc   :  { %v4987_v61 = vpop.eup %4986 }
 0xbcd   :  { %v4989_v62 = vpop.eup %4988  ;;  %v3017_v63 = vsel %vm258_vm3, %v4987_v61, 0.0  ;;  %v3274_v10 = vpop.permute.xlu1 %3273 }
 0xbce   :  { %3018 = vadd.xlane.f32.xlu1 %v3017_v63  ;;  %v3014_v0 = vsel %vm258_vm3, %v4989_v62, 0.0  ;;  %v3350_v5 = vpop.permute.xlu0 %3349 }
 0xbcf   :  { %3015 = vadd.xlane.f32.xlu0 %v3014_v0 }
 0xbd0   :  { %v4991_v1 = vpop.eup %4990 }
 0xbd1   :  { %v4993_v2 = vpop.eup %4992  ;;  %v3023_v3 = vsel %vm258_vm3, %v4991_v1, 0.0  ;;  %v3426_v14 = vpop.permute.xlu1 %3425 }
 0xbd2   :  { %3024 = vadd.xlane.f32.xlu1 %v3023_v3  ;;  %v3020_v6 = vsel %vm258_vm3, %v4993_v2, 0.0 }
 0xbd3   :  { %3021 = vadd.xlane.f32.xlu0 %v3020_v6 }
 0xbd4   :  { %v5616_v7 = vpop.eup %4994 }
 0xbd5   :  { %v3026_v8 = vsel %vm258_vm3, %v5616_v7, 0.0 }
 0xbd7   :  { %3027 = vadd.xlane.f32.xlu0 %v3026_v8  ;;  %v4386_v8 = vld [vmem:[%s5777_s4 + $0x28] sm:$0xff] }
 0xbe3   :  { %3577 = vrot.lane.b32.xlu1 %v5525_v43, %s5102_s28 }
 0xbed   :  { %3501 = vrot.lane.b32.xlu0 %v5529_v44, %s5102_s28 }
 0xbfe   :  { %v3010_v15 = vpop.xlane.xlu0 %3009 }
 0xbff   :  { %4996 = vrcp.f32 %v3010_v15  ;;  %v4389_v15 = vld [vmem:[%s5778_s5 + $0x40] sm:$0xff] }
 0xc02   :  { %v3007_v16 = vpop.xlane.xlu1 %3006 }
 0xc03   :  { %4998 = vrcp.f32 %v3007_v16  ;;  %v4390_v16 = vld [vmem:[%s5778_s5 + $0x48] sm:$0xff] }
 0xc09   :  { %v4997_v17 = vpop.eup %4996 }
 0xc0a   :  { %v3032_v18 = vmul.f32 %v4997_v17, %v5601_v29  ;;  %v4391_v17 = vld [vmem:[%s5778_s5 + $0x50] sm:$0xff] }
 0xc0c   :  { %4778 = vmatmul.mubr.msk.f32.vlgmr.msra.gmra.mrb[32].mxu0 %vm258_vm3, %v3032_v18  ;;  %v4912_v18 = vpack.c.bf16 %v4390_v16, %v4389_v15 }
 0xc0d   :  { %v4999_v19 = vpop.eup %4998  ;;  %4786 = vmatpush3.msra.mxu0 %v3274_v10  ;;  %4787 = vmatprep.mubr.msk.f32.mxu0 %vm5099_vm2, %v5096_v13 }
 0xc0e   :  { %v3030_v43 = vmul.f32 %v4999_v19, %v5605_v31  ;;  %4795 = vmatprep.subr.mxu0 %v5096_v13  ;;  %v4392_v19 = vld [vmem:[%s5778_s5 + $0x58] sm:$0xff] }
 0xc10   :  { %4773 = vmatmul.mubr.msk.f32.vlgmr.msra.gmra.mrb[34].mxu1 %vm258_vm3, %v3030_v43  ;;  %v4916_v43 = vpack.c.bf16 %v4392_v19, %v4391_v17 }
 0xc11   :  { %4781 = vmatpush3.msra.mxu1 %v3198_v9  ;;  %4782 = vmatprep.mubr.msk.f32.mxu1 %vm5099_vm2, %v5096_v13  ;;  %v4387_v9 = vld [vmem:[%s5777_s4 + $0x30] sm:$0xff] }
 0xc12   :  { %4790 = vmatprep.subr.mxu1 %v5096_v13 }
 0xc57   :  { %v3013_v44 = vpop.xlane.xlu1 %3012 }
 0xc58   :  { %5000 = vrcp.f32 %v3013_v44  ;;  %v4393_v44 = vld [vmem:[%s5778_s5 + $0x60] sm:$0xff] }
 0xc5b   :  { %v3019_v23 = vpop.xlane.xlu1 %3018 }
 0xc5c   :  { %5002 = vrcp.f32 %v3019_v23  ;;  %v3016_v11 = vpop.xlane.xlu0 %3015  ;;  %v4394_v23 = vld [vmem:[%s5778_s5 + $0x68] sm:$0xff] }
 0xc5d   :  { %5004 = vrcp.f32 %v3016_v11  ;;  %v4920_v11 = vpack.c.bf16 %v4394_v23, %v4393_v44 }
 0xc5f   :  { %v3025_v24 = vpop.xlane.xlu1 %3024 }
 0xc60   :  { %5006 = vrcp.f32 %v3025_v24  ;;  %v3022_v12 = vpop.xlane.xlu0 %3021 }
 0xc61   :  { %5008 = vrcp.f32 %v3022_v12 }
 0xc62   :  { %v5001_v27 = vpop.eup %5000 }
 0xc63   :  { %v3034_v28 = vmul.f32 %v5001_v27, %v4985_v56  ;;  %v3578_v41 = vpop.permute.xlu1 %3577 }
 0xc64   :  { %v3028_v29 = vpop.xlane.xlu0 %3027 }
 0xc65   :  { %5010 = vrcp.f32 %v3028_v29  ;;  %4783 = vmatmul.mubr.msk.f32.vlgmr.msra.gmra.mrb[36].mxu1 %vm258_vm3, %v3034_v28 }
 0xc66   :  { %v5003_v30 = vpop.eup %5002  ;;  %4791 = vmatpush3.msra.mxu1 %v3350_v5  ;;  %4792 = vmatprep.mubr.msk.f32.mxu1 %vm5099_vm2, %v5096_v13  ;;  %v4388_v5 = vld [vmem:[%s5777_s4 + $0x38] sm:$0xff] }
 0xc67   :  { %v5005_v31 = vpop.eup %5004  ;;  %v3038_v34 = vmul.f32 %v5003_v30, %v4987_v61  ;;  %4800 = vmatprep.subr.mxu1 %v5096_v13 }
 0xc68   :  { %v3036_v35 = vmul.f32 %v5005_v31, %v4989_v62  ;;  %v3502_v36 = vpop.permute.xlu0 %3501 }
 0xc69   :  { %4793 = vmatmul.mubr.msk.f32.vlgmr.msra.gmra.mrb[38].mxu1 %vm258_vm3, %v3038_v34 }
 0xc6a   :  { %v5007_v37 = vpop.eup %5006  ;;  %4788 = vmatmul.mubr.msk.f32.vlgmr.msra.gmra.mrb[34].mxu0 %vm258_vm3, %v3036_v35  ;;  %4801 = vmatpush3.msra.mxu1 %v3502_v36 }
 0xc6b   :  { %v5009_v33 = vpop.eup %5008  ;;  %v3042_v32 = vmul.f32 %v5007_v37, %v4991_v1  ;;  %4796 = vmatpush3.msra.mxu0 %v3426_v14  ;;  %4797 = vmatprep.mubr.msk.f32.mxu0 %vm5099_vm2, %v5096_v13  ;;  %v4908_v14 = vpack.c.bf16 %v4388_v5, %v4387_v9 }
 0xc6c   :  { %v3040_v40 = vmul.f32 %v5009_v33, %v4993_v2  ;;  %4802 = vmatprep.mubr.msk.f32.mxu1 %vm5099_vm2, %v5096_v13  ;;  %4805 = vmatprep.subr.mxu0 %v5096_v13 }
 0xc6d   :  { %4803 = vmatmul.mubr.msk.f32.vlgmr.msra.gmra.mrb[40].mxu1 %vm258_vm3, %v3042_v32  ;;  %4810 = vmatprep.subr.mxu1 %v4381_v55 }
 0xc6e   :  { %4798 = vmatmul.mubr.msk.f32.vlgmr.msra.gmra.mrb[36].mxu0 %vm258_vm3, %v3040_v40  ;;  %4811 = vmatpush3.msra.mxu1 %v4381_v55  ;;  %v5706_v55 = vld [vmem:[#allocation2 + $0x18] sm:$0xff] }
 0xc6f   :  { %v5011_v42 = vpop.eup %5010  ;;  %4806 = vmatpush3.msra.mxu0 %v3578_v41  ;;  %4807 = vmatprep.mubr.msk.f32.mxu0 %vm5099_vm2, %v5096_v13 }
 0xc70   :  { %v3044_v20 = vmul.f32 %v5011_v42, %v5616_v7  ;;  %4815 = vmatprep.subr.mxu0 %v4382_v21  ;;  %4820 = vmatprep.subr.mxu1 %v4383_v46  ;;  %v4385_v7 = vld [vmem:[%s5777_s4 + $0x20] sm:$0xff]  ;;  %v3994_v42 = vrot.slane %v5706_v55, %v1901_v52 }
 0xc71   :  { %v4904_v10 = vpack.c.bf16 %v4386_v8, %v4385_v7 }
 0xc72   :  { %4808 = vmatmul.mubr.msk.f32.vlgmr.msra.gmra.mrb[38].mxu0 %vm258_vm3, %v3044_v20 }
 0xc73   :  { %4816 = vmatpush3.msra.mxu0 %v4382_v21 }
 0xc74   :  { %4825 = vmatprep.subr.mxu0 %v4384_v47 }
 0xcdf   :  { %v3193_v13 = vpop.f32.mrb[32].mxu0 }
 0xce0   :  { %v4779_v48 = vpop.f32.mrb[33].mxu0 }
 0xce3   :  { %v3117_v49 = vpop.f32.mrb[34].mxu1 }
 0xce4   :  { %v4774_v50 = vpop.f32.mrb[35].mxu1  ;;  %4812 = vmatprep.mubr.msk.f32.mxu1 %vm258_vm3, %v3117_v49 }
 0xce5   :  { %4813 = vmatmul.mubr.msk.f32.vlgmr.msra.gmra.mrb[42].mxu1 %vm258_vm3, %v3193_v13 }
 0xce6   :  { %4821 = vmatpush3.msra.mxu1 %v4383_v46 }
 0xce7   :  { %4905 = vmatprep.subr.bf16.mxu1 %v4904_v10 }
 0xd38   :  { %v3269_v53 = vpop.f32.mrb[36].mxu1 }
 0xd39   :  { %v4784_v54 = vpop.f32.mrb[37].mxu1  ;;  %4817 = vmatprep.mubr.msk.f32.mxu0 %vm258_vm3, %v3269_v53 }
 0xd3c   :  { %v3421_v56 = vpop.f32.mrb[38].mxu1 }
 0xd3d   :  { %v3345_v57 = vpop.f32.mrb[34].mxu0  ;;  %v4794_v59 = vpop.f32.mrb[39].mxu1  ;;  %4822 = vmatprep.mubr.msk.f32.mxu1 %vm258_vm3, %v3421_v56 }
 0xd3e   :  { %v4789_v60 = vpop.f32.mrb[35].mxu0  ;;  %4818 = vmatmul.mubr.msk.f32.vlgmr.msra.gmra.mrb[40].mxu0 %vm258_vm3, %v3345_v57 }
 0xd3f   :  { %4826 = vmatpush3.msra.mxu0 %v4384_v47 }
 0xd40   :  { %v3573_v61 = vpop.f32.mrb[40].mxu1  ;;  %4913 = vmatprep.subr.bf16.mxu0 %v4912_v18 }
 0xd41   :  { %v3497_v62 = vpop.f32.mrb[36].mxu0  ;;  %v4804_v63 = vpop.f32.mrb[41].mxu1  ;;  %4827 = vmatprep.mubr.msk.f32.mxu0 %vm258_vm3, %v3573_v61 }
 0xd42   :  { %v4799_v0 = vpop.f32.mrb[37].mxu0  ;;  %4823 = vmatmul.mubr.msk.f32.vlgmr.msra.gmra.mrb[44].mxu1 %vm258_vm3, %v3497_v62 }
 0xd43   :  { %4907 = vmatpush3.bf16.msra.mxu1 %v4904_v10 }
 0xd44   :  { %4909 = vmatprep.subr.bf16.mxu1 %v4908_v14 }
 0xd45   :  { %v3649_v1 = vpop.f32.mrb[38].mxu0 }
 0xd46   :  { %v4809_v2 = vpop.f32.mrb[39].mxu0  ;;  %4828 = vmatmul.mubr.msk.f32.vlgmr.msra.gmra.mrb[42].mxu0 %vm258_vm3, %v3649_v1 }
 0xd47   :  { %4911 = vmatpush3.bf16.msra.mxu1 %v4908_v14  ;;  %4915 = vmatpush3.bf16.msra.mxu0 %v4912_v18 }
 0xd48   :  { %4917 = vmatprep.subr.bf16.mxu0 %v4916_v43 }
 0xd4b   :  { %4919 = vmatpush3.bf16.msra.mxu0 %v4916_v43 }
 0xd4c   :  { %4921 = vmatprep.subr.bf16.mxu0 %v4920_v11 }
 0xd4f   :  { %4923 = vmatpush3.bf16.msra.mxu0 %v4920_v11 }
 0xdb8   :  { %v4814_v3 = vpop.f32.mrb[42].mxu1 }
 0xdb9   :  { %v3725_v6 = vpop.f32.mrb[43].mxu1  ;;  %v3984_v12 = vsel %vm160_vm1, %v4814_v3, 0.0 }
 0xdba   :  { %v3977_v29 = vsel %vm160_vm1, %v3725_v6, 0.0 }
 0xe11   :  { %v4819_v24 = vpop.f32.mrb[40].mxu0 }
 0xe12   :  { %v3985_v27 = vsel %vm160_vm1, %v4819_v24, 0.0  ;;  %v3806_v28 = vpop.f32.mrb[41].mxu0 }
 0xe13   :  { %v3986_v30 = vadd.f32 %v3985_v27, %v3984_v12  ;;  %v3978_v31 = vsel %vm160_vm1, %v3806_v28, 0.0 }
 0xe14   :  { %v3979_v34 = vadd.f32 %v3978_v31, %v3977_v29 }
 0xe15   :  { %v4824_v35 = vpop.f32.mrb[44].mxu1 }
 0xe16   :  { %v3987_v36 = vsel %vm160_vm1, %v4824_v35, 0.0  ;;  %v3887_v37 = vpop.f32.mrb[45].mxu1 }
 0xe17   :  { %v3988_v33 = vadd.f32 %v3987_v36, %v3986_v30  ;;  %v3980_v32 = vsel %vm160_vm1, %v3887_v37, 0.0 }
 0xe18   :  { %v3981_v40 = vadd.f32 %v3980_v32, %v3979_v34 }
 0xe19   :  { %v4829_v41 = vpop.f32.mrb[42].mxu0 }
 0xe1a   :  { %v3989_v20 = vsel %vm160_vm1, %v4829_v41, 0.0  ;;  %v3968_v21 = vpop.f32.mrb[43].mxu0 }
 0xe1b   :  { %v3990_v46 = vadd.f32 %v3989_v20, %v3988_v33  ;;  %v3982_v47 = vsel %vm160_vm1, %v3968_v21, 0.0 }
 0xe1c   :  { %v3983_v13 = vadd.f32 %v3982_v47, %v3981_v40 }
 0xe1d   :  { %v3996_v48 = vadd.f32 %v3994_v42, %v3990_v46 }
 0xe1e   :  { %v3995_v49 = vadd.f32 %v3994_v42, %v3983_v13 }
 0xe1f   :  { %v3998_v50 = vadd.f32 %v3996_v48, %v5481_v39 }
 0xe20   :  { %v3997_v53 = vadd.f32 %v3995_v49, %v5479_v38 }
 0xe21   :  { %v4006_v54 = vsel %vm160_vm1, %v3998_v50, 0.0  ;;  %v4014_v56 = vmul.f32 %v3998_v50, %v3998_v50 }
 0xe22   :  { %v4007_v57 = vrot.slane %v4006_v54, 4  ;;  %v3999_v59 = vsel %vm160_vm1, %v3997_v53, 0.0  ;;  %v4013_v52 = vmul.f32 %v3997_v53, %v3997_v53 }
 0xe23   :  { %v4022_v60 = vsel %vm160_vm1, %v4014_v56, 0.0  ;;  %v4000_v61 = vrot.slane %v3999_v59, 4 }
 0xe24   :  { %v4008_v62 = vadd.f32 %v4007_v57, %v4006_v54  ;;  %v4023_v63 = vrot.slane %v4022_v60, 4  ;;  %v4015_v0 = vsel %vm160_vm1, %v4013_v52, 0.0  ;;  %v4396_v52 = vld [vmem:[%s5778_s5 + $0x78] sm:$0xff] }
 0xe25   :  { %v4001_v1 = vadd.f32 %v4000_v61, %v3999_v59  ;;  %v4016_v2 = vrot.slane %v4015_v0, 4 }
 0xe26   :  { %v4009_v3 = vrot.slane %v4008_v62, 2  ;;  %v4024_v39 = vadd.f32 %v4023_v63, %v4022_v60 }
 0xe27   :  { %v4002_v6 = vrot.slane %v4001_v1, 2  ;;  %v4017_v38 = vadd.f32 %v4016_v2, %v4015_v0 }
 0xe28   :  { %v4010_v7 = vadd.f32 %v4009_v3, %v4008_v62  ;;  %v4025_v8 = vrot.slane %v4024_v39, 2 }
 0xe29   :  { %v4003_v9 = vadd.f32 %v4002_v6, %v4001_v1  ;;  %v4018_v10 = vrot.slane %v4017_v38, 2  ;;  %v4163_v1 = vrot.slane %v5706_v55, %v2070_v26 }
 0xe2a   :  { %v4011_v5 = vrot.slane %v4010_v7, 1  ;;  %v4026_v14 = vadd.f32 %v4025_v8, %v4024_v39 }
 0xe2b   :  { %v4004_v15 = vrot.slane %v4003_v9, 1  ;;  %v4019_v16 = vadd.f32 %v4018_v10, %v4017_v38 }
 0xe2c   :  { %v4012_v17 = vadd.f32 %v4011_v5, %v4010_v7  ;;  %v4027_v18 = vrot.slane %v4026_v14, 1 }
 0xe2d   :  { %v4005_v19 = vadd.f32 %v4004_v15, %v4003_v9  ;;  %v4020_v43 = vrot.slane %v4019_v16, 1 }
 0xe2e   :  { %v4028_v44 = vadd.f32 %v4027_v18, %v4026_v14  ;;  %v4030_v23 = vmul.f32 0.125, %v4012_v17 }
 0xe2f   :  { %v4021_v11 = vadd.f32 %v4020_v43, %v4019_v16  ;;  %v4029_v24 = vmul.f32 0.125, %v4005_v19 }
 0xe30   :  { %v4032_v12 = vmul.f32 0.125, %v4028_v44  ;;  %v4034_v27 = vmul.f32 %v4030_v23, %v4030_v23 }
 0xe31   :  { %v4031_v28 = vmul.f32 0.125, %v4021_v11  ;;  %v4033_v29 = vmul.f32 %v4029_v24, %v4029_v24 }
 0xe32   :  { %v4036_v30 = vsub.f32 %v4032_v12, %v4034_v27 }
 0xe33   :  { %v4035_v31 = vsub.f32 %v4031_v28, %v4033_v29 }
 0xe34   :  { %v4038_v34 = vadd.f32 1e-05, %v4036_v30 }
 0xe35   :  { %v4037_v35 = vadd.f32 1e-05, %v4035_v31 }
 0xe36   :  { %5012 = vrsqrt.f32 %v4038_v34 }
 0xe37   :  { %5014 = vrsqrt.f32 %v4037_v35 }
 0xe40   :  { %v5013_v36 = vpop.eup %5012 }
 0xe41   :  { %v5015_v37 = vpop.eup %5014  ;;  %v4042_v33 = vmul.f32 %v5013_v36, %v5706_v55 }
 0xe42   :  { %v4041_v32 = vmul.f32 %v5015_v37, %v5706_v55 }
 0xe43   :  { %v4044_v40 = vmul.f32 %v4042_v33, %v4030_v23  ;;  %v4060_v46 = vrot.slane %v4042_v33, %v5427_v51 }
 0xe44   :  { %v4043_v41 = vmul.f32 %v4041_v32, %v4029_v24  ;;  %v4056_v21 = vrot.slane %v4041_v32, %v5427_v51  ;;  %v4395_v51 = vld [vmem:[%s5778_s5 + $0x70] sm:$0xff]  ;;  %s5103_s5 = smov [#allocation7]  }
 0xe45   :  { %v4048_v42 = vrot.slane %v4044_v40, 7  ;;  %v4062_v56 = vmul.f32 %v4060_v46, %v3998_v50  ;;  %v4924_v60 = vpack.c.bf16 %v4396_v52, %v4395_v51  ;;  %s4328_s19 = sshll.u32 %s5103_s5, 4  ;;  %s4329_s19 = int_to_ptr.vmem [resolvable:$true] %s4328_s19 }
 0xe46   :  { %v4047_v20 = vrot.slane %v4043_v41, 7  ;;  %v4061_v49 = vmul.f32 %v4056_v21, %v3997_v53  ;;  %s5064_s20 = scalar_lea.vmem %s4329_s19, 256  ;;  %p5069_p3 = scmp.lt.s32.totalorder %s4329_s19, %s4329_s19 }
 0xe47   :  { %v4052_v47 = vsub.f32 %v5706_v55, %v4048_v42  ;;  %4925 = vmatprep.subr.bf16.mxu0 %v4924_v60  ;;  %p5065_p2 = scmp.ne.s32.totalorder %s4329_s19, %s5064_s20  ;;  %p5070_p4 = scmp.lt.s32.totalorder %s5064_s20, %s5064_s20 }
 0xe48   :  { %v4051_v13 = vsub.f32 %v5706_v55, %v4047_v20  ;;  %4927 = vmatpush3.bf16.msra.mxu0 %v4924_v60 }
 0xe49   :  { %v4070_v48 = vrot.slane %v4052_v47, %v5431_v58  ;;  %p5071_p5 = por %p5070_p4, %p5069_p3 }
 0xe4a   :  { %v4066_v54 = vrot.slane %v4051_v13, %v5431_v58  ;;  %v4076_v58 = vrot.slane %v5706_v55, %v1983_v4 }
 0xe4b   :  { %v4072_v59 = vadd.f32 %v4070_v48, %v4062_v56  ;;  %p5072_p6 = pnand %p5071_p5, %p5065_p2 }
 0xe4c   :  { %v4071_v57 = vadd.f32 %v4066_v54, %v4061_v49 }
 0xe4e   :  { %4838 = vmatprep.mubr.msk.f32.mxu1 %vm160_vm1, %v4071_v57 }
 0xe4f   :  { %4839 = vmatmul.mubr.msk.f32.vlgmr.msra.gmra.mrb[46].mxu1 %vm160_vm1, %v4072_v59 }
 0xf22   :  { %v4840_v50 = vpop.f32.mrb[46].mxu1 }
 0xf23   :  { %v4155_v53 = vadd.f32 %v4840_v50, %v4076_v58  ;;  %v4149_v61 = vpop.f32.mrb[47].mxu1 }
 0xf24   :  { %v4150_v62 = vadd.f32 %v4149_v61, %v4076_v58 }
 0xf25   :  { %v4159_v0 = vmax.f32 %v4155_v53, 0.0 }
 0xf26   :  { %v4158_v63 = vmax.f32 %v4150_v62, 0.0 }
 0xf28   :  { %4857 = vmatprep.mubr.msk.f32.mxu0 %vm2072_vm4, %v4158_v63 }
 0xf29   :  { %4858 = vmatmul.mubr.msk.f32.vlgmr.msra.gmra.mrb[44].mxu0 %vm2072_vm4, %v4159_v0 }
 0xffc   :  { %v4859_v2 = vpop.f32.mrb[44].mxu0 }
 0xffd   :  { %v4242_v3 = vadd.f32 %v4859_v2, %v4163_v1  ;;  %v4236_v39 = vpop.f32.mrb[45].mxu0 }
 0xffe   :  { %v4237_v6 = vadd.f32 %v4236_v39, %v4163_v1 }
 0xfff   :  { %v4246_v38 = vadd.f32 %v4242_v3, %v4072_v59 }
0x1000   :  { %v4245_v4 = vadd.f32 %v4237_v6, %v4071_v57 }
0x1001   :  { %v4254_v7 = vsel %vm160_vm1, %v4246_v38, 0.0  ;;  %v4262_v8 = vmul.f32 %v4246_v38, %v4246_v38 }
0x1002   :  { %v4255_v9 = vrot.slane %v4254_v7, 4  ;;  %v4247_v10 = vsel %vm160_vm1, %v4245_v4, 0.0  ;;  %v4261_v5 = vmul.f32 %v4245_v4, %v4245_v4 }
0x1003   :  { %v4270_v14 = vsel %vm160_vm1, %v4262_v8, 0.0  ;;  %v4248_v15 = vrot.slane %v4247_v10, 4 }
0x1004   :  { %v4256_v16 = vadd.f32 %v4255_v9, %v4254_v7  ;;  %v4271_v45 = vrot.slane %v4270_v14, 4  ;;  %v4263_v26 = vsel %vm160_vm1, %v4261_v5, 0.0 }
0x1005   :  { %v4249_v17 = vadd.f32 %v4248_v15, %v4247_v10  ;;  %v4264_v18 = vrot.slane %v4263_v26, 4 }
0x1006   :  { %v4257_v19 = vrot.slane %v4256_v16, 2  ;;  %v4272_v43 = vadd.f32 %v4271_v45, %v4270_v14 }
0x1007   :  { %v4250_v44 = vrot.slane %v4249_v17, 2  ;;  %v4265_v23 = vadd.f32 %v4264_v18, %v4263_v26 }
0x1008   :  { %v4258_v11 = vadd.f32 %v4257_v19, %v4256_v16  ;;  %v4273_v24 = vrot.slane %v4272_v43, 2 }
0x1009   :  { %v4251_v12 = vadd.f32 %v4250_v44, %v4249_v17  ;;  %v4266_v27 = vrot.slane %v4265_v23, 2 }
0x100a   :  { %v4259_v28 = vrot.slane %v4258_v11, 1  ;;  %v4274_v29 = vadd.f32 %v4273_v24, %v4272_v43 }
0x100b   :  { %v4252_v30 = vrot.slane %v4251_v12, 1  ;;  %v4267_v31 = vadd.f32 %v4266_v27, %v4265_v23 }
0x100c   :  { %v4260_v34 = vadd.f32 %v4259_v28, %v4258_v11  ;;  %v4275_v35 = vrot.slane %v4274_v29, 1 }
0x100d   :  { %v4253_v36 = vadd.f32 %v4252_v30, %v4251_v12  ;;  %v4268_v37 = vrot.slane %v4267_v31, 1 }
0x100e   :  { %v4276_v33 = vadd.f32 %v4275_v35, %v4274_v29  ;;  %v4278_v32 = vmul.f32 0.125, %v4260_v34 }
0x100f   :  { %v4269_v40 = vadd.f32 %v4268_v37, %v4267_v31  ;;  %v4277_v41 = vmul.f32 0.125, %v4253_v36 }
0x1010   :  { %v4280_v42 = vmul.f32 0.125, %v4276_v33  ;;  %v4282_v20 = vmul.f32 %v4278_v32, %v4278_v32 }
0x1011   :  { %v4279_v21 = vmul.f32 0.125, %v4269_v40  ;;  %v4281_v46 = vmul.f32 %v4277_v41, %v4277_v41 }
0x1012   :  { %v4284_v47 = vsub.f32 %v4280_v42, %v4282_v20 }
0x1013   :  { %v4283_v13 = vsub.f32 %v4279_v21, %v4281_v46 }
0x1014   :  { %v4286_v48 = vadd.f32 1e-05, %v4284_v47 }
0x1015   :  { %v4285_v49 = vadd.f32 1e-05, %v4283_v13 }
0x1016   :  { %5016 = vrsqrt.f32 %v4286_v48 }
0x1017   :  { %5018 = vrsqrt.f32 %v4285_v49 }
0x1020   :  { %v5017_v54 = vpop.eup %5016 }
0x1021   :  { %v5019_v56 = vpop.eup %5018  ;;  %v4290_v57 = vmul.f32 %v5017_v54, %v5706_v55 }
0x1022   :  { %v4289_v59 = vmul.f32 %v5019_v56, %v5706_v55 }
0x1023   :  { %v4292_v51 = vmul.f32 %v4290_v57, %v4278_v32  ;;  %v4308_v58 = vrot.slane %v4290_v57, %v5467_v22 }
0x1024   :  { %v4291_v52 = vmul.f32 %v4289_v59, %v4277_v41  ;;  %v4304_v53 = vrot.slane %v4289_v59, %v5467_v22 }
0x1025   :  { %v4296_v60 = vrot.slane %v4292_v51, 7  ;;  %v4310_v63 = vmul.f32 %v4308_v58, %v4246_v38 }
0x1026   :  { %v4295_v50 = vrot.slane %v4291_v52, 7  ;;  %v4309_v1 = vmul.f32 %v4304_v53, %v4245_v4 }
0x1027   :  { %v4300_v61 = vsub.f32 %v5706_v55, %v4296_v60 }
0x1028   :  { %v4299_v62 = vsub.f32 %v5706_v55, %v4295_v50 }
0x1029   :  { %v4318_v0 = vrot.slane %v4300_v61, %v5471_v25 }
0x102a   :  { %v4314_v2 = vrot.slane %v4299_v62, %v5471_v25 }
0x102b   :  { %v4320_v3 = vadd.f32 %v4318_v0, %v4310_v63 }
0x102c   :  { %v4319_v39 = vadd.f32 %v4314_v2, %v4309_v1 }
0x102d   :  { %4322 = vst.msk [vmem:[#allocation7 + $0x8] sm:$0xff] %vm160_vm1, %v4320_v3 }
0x102e   :  { %4321 = vst.msk [vmem:[#allocation7] sm:$0xff] %vm160_vm1, %v4319_v39 }
0x102f   :  { %5075 = shalt.err (!%p5072_p6)
}
0x1030   :  { %s5076_s21 = scalar_lea.hbm %s5779_s6, 256 }
0x1031   :  { %p5077_p7 = scmp.ne.s32.totalorder %s5779_s6, %s5076_s21  ;;  %p5080_p8 = scmp.lt.u32.totalorder %s5076_s21, %s5779_s6 }
0x1033   :  { %p5082_p9 = pnand %p5080_p8, %p5077_p7 }
0x1035   :  { %5085 = shalt.err (!%p5082_p9)
}
0x1036   :  { %4334 = dma.vmem_to_hbm [thread:$0]  %s4329_s19, 256, %s5779_s6, [#allocation4], %s5093_s7, %s5093_s7, %s5094_s8  }
0x1037   :  { %5090 = dma.done.wait [#allocation4], 256  }
0x1038   :  { %5091 = vsyncadd [#allocation4], 4294967040 }
0x1039   :  { %4338 = vsyncpa [#allocation3], 1 }
0x103a   :  { %4339 = vsyncpa [#allocation6], 1 }
0x103b   :  { %4340 = vsyncpa [#allocation4], 1 }

</bundles_post_ra>
